<compile_context>
chip_gen: v7x
topology: tpu7x:2x2x1
jax: 0.10.0
libtpu: 0.0.40
codegen_flags: <defaults>
</compile_context>

<pallas_src>
import math

import jax
import jax.numpy as jnp
from jax.experimental import pallas as pl
from jax.experimental.pallas import tpu as pltpu


def _round_up(x: int, m: int) -> int:
    return ((x + m - 1) // m) * m


def _vmem_capacity_bytes() -> int:
    """Physical VMEM per TensorCore, generation-aware with safe fallbacks."""
    try:
        info = pltpu.get_tpu_info()
        for name in ("vmem_capacity_bytes", "vmem_size_bytes", "vmem_bytes"):
            cap = getattr(info, name, None)
            if cap:
                return int(cap)
    except Exception:
        pass
    try:
        kind = jax.devices()[0].device_kind.lower()
        if "v7" in kind or "7x" in kind:
            return 64 << 20
        if "v5" in kind or "v6" in kind:
            return 128 << 20
    except Exception:
        pass
    return 64 << 20  # conservative (v7x-sized) default


def _tensorcores_per_chip() -> int:
    try:
        info = pltpu.get_tpu_info()
        for name in ("num_cores", "cores_per_chip", "num_tensorcores"):
            n = getattr(info, name, None)
            if n:
                return min(int(n), 2)
    except Exception:
        pass
    try:
        kind = jax.devices()[0].device_kind.lower()
        if "v7" in kind or "7x" in kind or "v4" in kind:
            return 2
    except Exception:
        pass
    return 1


def _block_spec(shape, index_map, invariant=False):
    """Default double-buffered BlockSpec; single-buffered when grid-invariant."""
    if invariant:
        return pl.BlockSpec(shape, index_map, pipeline_mode=pl.Buffered(1))
    return pl.BlockSpec(shape, index_map)


def _vmem_needed(tb, tk, tm, latent_p):
    """Conservative VMEM estimate for one pipeline stage set (bytes)."""
    return (2 * tb * tk * 2            # x tile (bf16, double-buffered)
            + 2 * tk * tm * 2          # w1 tile (bf16, double-buffered)
            + 2 * 8 * tm * 4           # b1 tile (f32, 8-sublane padded)
            + 2 * tm * latent_p * 2    # w2 tile (bf16)
            + 8 * latent_p * 4         # b2 (invariant, single buffer)
            + 2 * tb * latent_p * 4    # out tile (f32)
            + tb * tm * 4              # layer-1 f32 accumulator scratch
            + tb * latent_p * 4)       # layer-2 f32 accumulator scratch


def _choose_tiles(B, entry_p, mid_p, latent_p, vmem_budget,
                  tb_max, tk_max, tm_max, n_cores):
    b_r = _round_up(B, 8)
    tb = min(tb_max, b_r)
    # Megacore: give the "parallel" batch axis >= n_cores tiles when B allows,
    # so both TensorCores of a v7x chip get work.
    if n_cores >= 2 and b_r > 8 and _round_up(B, tb) // tb < n_cores:
        tb = min(tb, _round_up(-(-B // n_cores), 8))

    tk = min(tk_max, entry_p)
    tm = min(tm_max, mid_p)

    # Deterministic shrink: prefer keeping tb large (amortizes w1 streaming),
    # shrink mid/K tiles first, and never request more VMEM than the budget.
    while _vmem_needed(tb, tk, tm, latent_p) > vmem_budget:
        if tm > 512:
            tm = _round_up(tm // 2, 128)
        elif tk > 512:
            tk = _round_up(tk // 2, 128)
        elif tb > 256:
            tb = _round_up(tb // 2, 8)
        elif tm > 128:
            tm = _round_up(tm // 2, 128)
        elif tk > 128:
            tk = _round_up(tk // 2, 128)
        elif tb > 8:
            tb = _round_up(tb // 2, 8)
        else:
            break
    return tb, tk, tm, _vmem_needed(tb, tk, tm, latent_p)


def _encoder_kernel(x_ref, w1_ref, b1_ref, w2_ref, b2_ref, o_ref,
                    acc1_ref, acc2_ref):
    """Grid: (batch, mid, K). K and mid are accumulation ('arbitrary') axes."""
    m = pl.program_id(1)
    k = pl.program_id(2)
    nm = pl.num_programs(1)
    nk = pl.num_programs(2)

    @pl.when(k == 0)
    def _():
        acc1_ref[...] = jnp.zeros_like(acc1_ref)

    @pl.when(jnp.logical_and(m == 0, k == 0))
    def _():
        acc2_ref[...] = jnp.zeros_like(acc2_ref)

    # Layer-1 partial product: bf16 MXU feed, f32 accumulation.
    acc1_ref[...] += jnp.dot(x_ref[...], w1_ref[...],
                             preferred_element_type=jnp.float32)

    @pl.when(k == nk - 1)
    def _():
        h = jnp.maximum(acc1_ref[...] + b1_ref[...], 0.0).astype(jnp.bfloat16)
        acc2_ref[...] += jnp.dot(h, w2_ref[...],
                                 preferred_element_type=jnp.float32)

    @pl.when(jnp.logical_and(m == nm - 1, k == nk - 1))
    def _():
        o_ref[...] = (acc2_ref[...] + b2_ref[...]).astype(o_ref.dtype)


def encoder_forward(x, w1, b1, w2, b2, *, tb_max=512, tk_max=2048, tm_max=2048):
    """x: (B, ...) arbitrary trailing dims (flattened from dim 1, like torch).

    Parameters stored (in, out), i.e. transposed vs PyTorch's (out, in):
      w1: (entry, mid), b1: (1, mid), w2: (mid, latent), b2: (1, latent)
    """
    B = x.shape[0]
    entry = int(math.prod(x.shape[1:]))
    mid = w1.shape[1]
    latent = w2.shape[1]

    # ---- lane-/sublane-aligned padded sizes -------------------------------
    entry_p = _round_up(entry, 128)
    mid_p = _round_up(mid, 128)
    latent_p = _round_up(latent, 128)

    # ---- generation-aware VMEM budget & tile selection --------------------
    vmem_cap = _vmem_capacity_bytes()
    n_cores = _tensorcores_per_chip()
    vmem_budget = max(int(vmem_cap * 0.85) - (8 << 20), 8 << 20)

    tb, tk, tm, needed = _choose_tiles(B, entry_p, mid_p, latent_p,
                                       vmem_budget, tb_max, tk_max, tm_max,
                                       n_cores)

    entry_p = _round_up(entry_p, tk)
    mid_p = _round_up(mid_p, tm)
    b_p = _round_up(B, tb)
    nk = entry_p // tk
    nm = mid_p // tm
    nb = b_p // tb

    # ---- pad operands (zero padding is exact) ------------------------------
    # x streamed as bf16 (cast fused into the pad copy) -> half the HBM bytes.
    x2d = jnp.pad(x.reshape(B, entry).astype(jnp.bfloat16),
                  ((0, b_p - B), (0, entry_p - entry)))
    w1_p = jnp.pad(w1.astype(jnp.bfloat16),
                   ((0, entry_p - entry), (0, mid_p - mid)))
    b1_p = jnp.pad(b1.astype(jnp.float32), ((0, 0), (0, mid_p - mid)))
    w2_p = jnp.pad(w2.astype(jnp.bfloat16),
                   ((0, mid_p - mid), (0, latent_p - latent)))
    b2_p = jnp.pad(b2.astype(jnp.float32), ((0, 0), (0, latent_p - latent)))

    vmem_limit = int(min(int(vmem_cap * 0.9), needed + (16 << 20)))
    vmem_limit = max(vmem_limit, 16 << 20)

    out_p = pl.pallas_call(
        _encoder_kernel,
        out_shape=jax.ShapeDtypeStruct((b_p, latent_p), jnp.float32),
        grid_spec=pltpu.PrefetchScalarGridSpec(
            num_scalar_prefetch=0,
            grid=(nb, nm, nk),
            in_specs=[
                # x: (batch tile, K tile)
                _block_spec((tb, tk), lambda i, m, k: (i, k),
                            invariant=(nb == 1 and nk == 1)),
                # w1: (K tile, mid tile)
                _block_spec((tk, tm), lambda i, m, k: (k, m),
                            invariant=(nk == 1 and nm == 1)),
                # b1: (1, mid tile)
                _block_spec((1, tm), lambda i, m, k: (0, m),
                            invariant=(nm == 1)),
                # w2: (mid tile, latent)
                _block_spec((tm, latent_p), lambda i, m, k: (m, 0),
                            invariant=(nm == 1)),
                # b2: (1, latent) -- always grid-invariant
                _block_spec((1, latent_p), lambda i, m, k: (0, 0),
                            invariant=True),
            ],
            out_specs=pl.BlockSpec((tb, latent_p), lambda i, m, k: (i, 0)),
            scratch_shapes=[
                pltpu.VMEM((tb, tm), jnp.float32),        # layer-1 accumulator
                pltpu.VMEM((tb, latent_p), jnp.float32),  # layer-2 accumulator
            ],
        ),
        compiler_params=pltpu.CompilerParams(
            dimension_semantics=("parallel", "arbitrary", "arbitrary"),
            vmem_limit_bytes=int(vmem_limit),
        ),
    )(x2d, w1_p, b1_p, w2_p, b2_p)

    return out_p[:B, :latent]


def init_encoder_params(key, entry_size, latent_dims):
    """Deterministic init mimicking nn.Linear's U(-1/sqrt(fan_in), 1/sqrt(fan_in))."""
    midsize = latent_dims + (entry_size - latent_dims) // 2
    k1, k2, k3, k4 = jax.random.split(key, 4)
    lim1 = 1.0 / (entry_size ** 0.5)
    lim2 = 1.0 / (midsize ** 0.5)
    # stored as (in, out): transposed relative to PyTorch's weight layout
    w1 = jax.random.uniform(k1, (entry_size, midsize), jnp.float32, -lim1, lim1)
    b1 = jax.random.uniform(k2, (1, midsize), jnp.float32, -lim1, lim1)
    w2 = jax.random.uniform(k3, (midsize, latent_dims), jnp.float32, -lim2, lim2)
    b2 = jax.random.uniform(k4, (1, latent_dims), jnp.float32, -lim2, lim2)
    return w1, b1, w2, b2


if __name__ == "__main__":
    key = jax.random.PRNGKey(0)
    kx, kp = jax.random.split(key)

    # example input: (batch=2, channels=4, spatial=16x16) -> entry_size = 1024
    B, C, H, W = 2, 4, 16, 16
    entry_size = C * H * W          # 1024
    latent_dims = 16                # midsize = 16 + (1024-16)//2 = 520
    x = jax.random.normal(kx, (B, C, H, W), dtype=jnp.float32)

    w1, b1, w2, b2 = init_encoder_params(kp, entry_size, latent_dims)

    # reference in plain JAX f32 (kernel uses bf16 matmuls + f32 accumulation)
    x2d = x.reshape(B, -1)
    ref = jnp.maximum(x2d @ w1 + b1, 0.0) @ w2 + b2

    # 1) default (generation-aware) tiling
    y = jax.block_until_ready(encoder_forward(x, w1, b1, w2, b2))
    assert y.shape == (B, latent_dims)
    assert jnp.allclose(y, ref, atol=5e-2, rtol=5e-2), float(jnp.max(jnp.abs(y - ref)))

    # 2) forced small tiles -> exercises multi-tile K and mid accumulation paths
    y2 = jax.block_until_ready(
        encoder_forward(x, w1, b1, w2, b2, tb_max=8, tk_max=256, tm_max=256))
    assert y2.shape == (B, latent_dims)
    assert jnp.allclose(y2, ref, atol=5e-2, rtol=5e-2), float(jnp.max(jnp.abs(y2 - ref)))

    print("KERNEL_OK")
</pallas_src>

<mosaic_0001>
module attributes {stable_mosaic.version = 11 : i64} {
  func.func @_encoder_kernel(%arg0: i32, %arg1: i32, %arg2: i32, %arg3: memref<8x1024xbf16, #tpu.memory_space<vmem>>, %arg4: memref<1024x640xbf16, #tpu.memory_space<vmem>>, %arg5: memref<1x640xf32, #tpu.memory_space<vmem>>, %arg6: memref<640x128xbf16, #tpu.memory_space<vmem>>, %arg7: memref<1x128xf32, #tpu.memory_space<vmem>>, %arg8: memref<8x128xf32, #tpu.memory_space<vmem>>, %arg9: memref<8x640xf32, #tpu.memory_space<vmem>>, %arg10: memref<8x128xf32, #tpu.memory_space<vmem>>) attributes {dimension_semantics = [#tpu.dimension_semantics<parallel>, #tpu.dimension_semantics<arbitrary>, #tpu.dimension_semantics<arbitrary>], iteration_bounds = array<i64: 1, 1, 1>, scalar_prefetch = 0 : i64, scratch_operands = 2 : i64, tpu.core_type = #tpu.core_type<tc>, window_params = [{pipeline_mode = #tpu.pipeline_mode<synchronous>, transform_indices = @transform_0, window_bounds = array<i64: 8, 1024>}, {pipeline_mode = #tpu.pipeline_mode<synchronous>, transform_indices = @transform_1, window_bounds = array<i64: 1024, 640>}, {pipeline_mode = #tpu.pipeline_mode<synchronous>, transform_indices = @transform_2, window_bounds = array<i64: 1, 640>}, {pipeline_mode = #tpu.pipeline_mode<synchronous>, transform_indices = @transform_3, window_bounds = array<i64: 640, 128>}, {pipeline_mode = #tpu.pipeline_mode<synchronous>, transform_indices = @transform_4, window_bounds = array<i64: 1, 128>}, {transform_indices = @transform_5, window_bounds = array<i64: 8, 128>}]} {
    %c0_i32 = arith.constant 0 : i32
    %0 = arith.cmpi eq, %arg2, %c0_i32 : i32
    %1 = arith.extui %0 : i1 to i32
    %c0_i32_0 = arith.constant 0 : i32
    %2 = arith.cmpi ne, %1, %c0_i32_0 : i32
    scf.if %2 {
      %cst_16 = arith.constant 0.000000e+00 : f32
      %22 = vector.broadcast %cst_16 : f32 to vector<8x640xf32>
      %c0_17 = arith.constant 0 : index
      %c0_18 = arith.constant 0 : index
      %23 = vector.load %arg9[%c0_17, %c0_18] : memref<8x640xf32, #tpu.memory_space<vmem>>, vector<8x640xf32>
      tpu.vector_store %arg9[%c0_17, %c0_18], %22 {strides = array<i32>} : memref<8x640xf32, #tpu.memory_space<vmem>>, vector<8x640xf32>,
    } else {
    }
    %c0_i32_1 = arith.constant 0 : i32
    %3 = arith.cmpi eq, %arg1, %c0_i32_1 : i32
    %c0_i32_2 = arith.constant 0 : i32
    %4 = arith.cmpi eq, %arg2, %c0_i32_2 : i32
    %5 = arith.andi %3, %4 : i1
    %6 = arith.extui %5 : i1 to i32
    %c0_i32_3 = arith.constant 0 : i32
    %7 = arith.cmpi ne, %6, %c0_i32_3 : i32
    scf.if %7 {
      %cst_16 = arith.constant 0.000000e+00 : f32
      %22 = vector.broadcast %cst_16 : f32 to vector<8x128xf32>
      %c0_17 = arith.constant 0 : index
      %c0_18 = arith.constant 0 : index
      %23 = vector.load %arg10[%c0_17, %c0_18] : memref<8x128xf32, #tpu.memory_space<vmem>>, vector<8x128xf32>
      tpu.vector_store %arg10[%c0_17, %c0_18], %22 {strides = array<i32>} : memref<8x128xf32, #tpu.memory_space<vmem>>, vector<8x128xf32>,
    } else {
    }
    %c0 = arith.constant 0 : index
    %c0_4 = arith.constant 0 : index
    %8 = vector.load %arg9[%c0, %c0_4] : memref<8x640xf32, #tpu.memory_space<vmem>>, vector<8x640xf32>
    %c0_5 = arith.constant 0 : index
    %c0_6 = arith.constant 0 : index
    %9 = vector.load %arg3[%c0_5, %c0_6] : memref<8x1024xbf16, #tpu.memory_space<vmem>>, vector<8x1024xbf16>
    %c0_7 = arith.constant 0 : index
    %c0_8 = arith.constant 0 : index
    %10 = vector.load %arg4[%c0_7, %c0_8] : memref<1024x640xbf16, #tpu.memory_space<vmem>>, vector<1024x640xbf16>
    %cst = arith.constant dense<0.000000e+00> : vector<8x640xf32>
    %11 = tpu.matmul %9, %10, %cst {dimension_numbers = #tpu.dot_dimension_numbers<[1], [0], [0], [1], [0, 0, 1, 1], [], []>} : vector<8x1024xbf16>, vector<1024x640xbf16>, vector<8x640xf32> -> vector<8x640xf32>
    %12 = arith.addf %8, %11 : vector<8x640xf32>
    %c0_9 = arith.constant 0 : index
    %c0_10 = arith.constant 0 : index
    %13 = vector.load %arg9[%c0_9, %c0_10] : memref<8x640xf32, #tpu.memory_space<vmem>>, vector<8x640xf32>
    tpu.vector_store %arg9[%c0_9, %c0_10], %12 {strides = array<i32>} : memref<8x640xf32, #tpu.memory_space<vmem>>, vector<8x640xf32>,
    %c0_i32_11 = arith.constant 0 : i32
    %14 = arith.cmpi eq, %arg2, %c0_i32_11 : i32
    %15 = arith.extui %14 : i1 to i32
    %c0_i32_12 = arith.constant 0 : i32
    %16 = arith.cmpi ne, %15, %c0_i32_12 : i32
    scf.if %16 {
      %c0_16 = arith.constant 0 : index
      %c0_17 = arith.constant 0 : index
      %22 = vector.load %arg9[%c0_16, %c0_17] : memref<8x640xf32, #tpu.memory_space<vmem>>, vector<8x640xf32>
      %c0_18 = arith.constant 0 : index
      %c0_19 = arith.constant 0 : index
      %23 = vector.load %arg5[%c0_18, %c0_19] : memref<1x640xf32, #tpu.memory_space<vmem>>, vector<1x640xf32>
      %24 = vector.broadcast %23 : vector<1x640xf32> to vector<8x640xf32>
      %25 = arith.addf %22, %24 : vector<8x640xf32>
      %cst_20 = arith.constant 0.000000e+00 : f32
      %26 = vector.broadcast %cst_20 : f32 to vector<8x640xf32>
      %27 = arith.maximumf %25, %26 : vector<8x640xf32>
      %28 = arith.truncf %27 : vector<8x640xf32> to vector<8x640xbf16>
      %c0_21 = arith.constant 0 : index
      %c0_22 = arith.constant 0 : index
      %29 = vector.load %arg10[%c0_21, %c0_22] : memref<8x128xf32, #tpu.memory_space<vmem>>, vector<8x128xf32>
      %c0_23 = arith.constant 0 : index
      %c0_24 = arith.constant 0 : index
      %30 = vector.load %arg6[%c0_23, %c0_24] : memref<640x128xbf16, #tpu.memory_space<vmem>>, vector<640x128xbf16>
      %cst_25 = arith.constant dense<0.000000e+00> : vector<8x128xf32>
      %31 = tpu.matmul %28, %30, %cst_25 {dimension_numbers = #tpu.dot_dimension_numbers<[1], [0], [0], [1], [0, 0, 1, 1], [], []>} : vector<8x640xbf16>, vector<640x128xbf16>, vector<8x128xf32> -> vector<8x128xf32>
      %32 = arith.addf %29, %31 : vector<8x128xf32>
      %c0_26 = arith.constant 0 : index
      %c0_27 = arith.constant 0 : index
      %33 = vector.load %arg10[%c0_26, %c0_27] : memref<8x128xf32, #tpu.memory_space<vmem>>, vector<8x128xf32>
      tpu.vector_store %arg10[%c0_26, %c0_27], %32 {strides = array<i32>} : memref<8x128xf32, #tpu.memory_space<vmem>>, vector<8x128xf32>,
    } else {
    }
    %c0_i32_13 = arith.constant 0 : i32
    %17 = arith.cmpi eq, %arg1, %c0_i32_13 : i32
    %c0_i32_14 = arith.constant 0 : i32
    %18 = arith.cmpi eq, %arg2, %c0_i32_14 : i32
    %19 = arith.andi %17, %18 : i1
    %20 = arith.extui %19 : i1 to i32
    %c0_i32_15 = arith.constant 0 : i32
    %21 = arith.cmpi ne, %20, %c0_i32_15 : i32
    scf.if %21 {
      %c0_16 = arith.constant 0 : index
      %c0_17 = arith.constant 0 : index
      %22 = vector.load %arg10[%c0_16, %c0_17] : memref<8x128xf32, #tpu.memory_space<vmem>>, vector<8x128xf32>
      %c0_18 = arith.constant 0 : index
      %c0_19 = arith.constant 0 : index
      %23 = vector.load %arg7[%c0_18, %c0_19] : memref<1x128xf32, #tpu.memory_space<vmem>>, vector<1x128xf32>
      %24 = vector.broadcast %23 : vector<1x128xf32> to vector<8x128xf32>
      %25 = arith.addf %22, %24 : vector<8x128xf32>
      %c0_20 = arith.constant 0 : index
      %c0_21 = arith.constant 0 : index
      %26 = vector.load %arg8[%c0_20, %c0_21] : memref<8x128xf32, #tpu.memory_space<vmem>>, vector<8x128xf32>
      tpu.vector_store %arg8[%c0_20, %c0_21], %25 {strides = array<i32>} : memref<8x128xf32, #tpu.memory_space<vmem>>, vector<8x128xf32>,
    } else {
    }
    return
  }
  func.func @transform_0(%arg0: i32, %arg1: i32, %arg2: i32) -> (i32, i32) {
    %c0_i32 = arith.constant 0 : i32
    return %arg0, %arg2 : i32, i32
  }
  func.func @transform_1(%arg0: i32, %arg1: i32, %arg2: i32) -> (i32, i32) {
    %c0_i32 = arith.constant 0 : i32
    return %arg2, %arg1 : i32, i32
  }
  func.func @transform_2(%arg0: i32, %arg1: i32, %arg2: i32) -> (i32, i32) {
    %c0_i32 = arith.constant 0 : i32
    %c0_i32_0 = arith.constant 0 : i32
    return %c0_i32, %arg1 : i32, i32
  }
  func.func @transform_3(%arg0: i32, %arg1: i32, %arg2: i32) -> (i32, i32) {
    %c0_i32 = arith.constant 0 : i32
    %c0_i32_0 = arith.constant 0 : i32
    return %arg1, %c0_i32 : i32, i32
  }
  func.func @transform_4(%arg0: i32, %arg1: i32, %arg2: i32) -> (i32, i32) {
    %c0_i32 = arith.constant 0 : i32
    %c0_i32_0 = arith.constant 0 : i32
    %c0_i32_1 = arith.constant 0 : i32
    return %c0_i32, %c0_i32_0 : i32, i32
  }
  func.func @transform_5(%arg0: i32, %arg1: i32, %arg2: i32) -> (i32, i32) {
    %c0_i32 = arith.constant 0 : i32
    %c0_i32_0 = arith.constant 0 : i32
    return %arg0, %c0_i32 : i32, i32
  }
}

</mosaic_0001>

<bundles_post_ra>
// kernel: tpu_custom_call.1
= control target key start
LH: loop header
LB: loop body
LE: loop exit
PB: predicated region body
PF: predicated region fallthrough
CT: control target
= control target key end

     0   :  { %10 = vsyncpa [#allocation5], 0  ;;  %s4568_s0 = inlined_call_operand.hbm [shape: bf16[8,1024], index: 0, kind: input, shape index: {}]   ;;  %s4569_s1 = inlined_call_operand.hbm [shape: bf16[1024,640], index: 1, kind: input, shape index: {}]   ;;  %s4570_s2 = inlined_call_operand.hbm [shape: f32[1,640], index: 2, kind: input, shape index: {}]   ;;  %s4571_s3 = inlined_call_operand.hbm [shape: bf16[640,128], index: 3, kind: input, shape index: {}]   ;;  %s4572_s4 = inlined_call_operand.hbm [shape: f32[1,128], index: 4, kind: input, shape index: {}]   ;;  %s4573_s5 = inlined_call_operand.hbm [shape: f32[8,128], index: 5, kind: output, shape index: {}]  }
   0x1   :  { %11 = vsyncpa [#allocation8], 0 }
   0x2   :  { %12 = vsyncpa [#allocation11], 0 }
   0x3   :  { %13 = vsyncpa [#allocation6], 0  ;;  %s4382_s18 = smov [#allocation7]   ;;  %s4242_s22 = scalar_lea.hbm %s4569_s1, 40960 }
   0x4   :  { %s29_s19 = sshll.u32 %s4382_s18, 4  ;;  %p4243_p0 = scmp.ne.s32.totalorder %s4569_s1, %s4242_s22  ;;  %s30_s19 = int_to_ptr.vmem [resolvable:$true] %s29_s19 }
   0x5   :  { %p4246_p1 = scmp.lt.u32.totalorder %s4242_s22, %s4569_s1 }
   0x7   :  { %p4248_p2 = pnand %p4246_p1, %p4243_p0 }
   0x9   :  { %4251 = shalt.err (!%p4248_p2)
}
   0xa   :  { %s4252_s27 = scalar_lea.vmem %s30_s19, 40960  ;;  %p4257_p4 = scmp.lt.s32.totalorder %s30_s19, %s30_s19 }
   0xb   :  { %p4253_p3 = scmp.ne.s32.totalorder %s30_s19, %s4252_s27  ;;  %p4258_p5 = scmp.lt.s32.totalorder %s4252_s27, %s4252_s27 }
   0xd   :  { %p4259_p6 = por %p4258_p5, %p4257_p4 }
   0xf   :  { %p4260_p7 = pnand %p4259_p6, %p4253_p3 }
  0x11   :  { %4263 = shalt.err (!%p4260_p7)
}
  0x12   :  { %s4383_s28 = smov 320   ;;  %s4384_s29 = smov 20  }
  0x13   :  { %35 = dma.hbm_to_vmem [thread:$0]  %s4569_s1, 40960, %s30_s19, [#allocation8], %s4383_s28, %s4383_s28, %s4384_s29  }
  0x14   :  { %s4385_s7 = smov [#allocation10]   ;;  %s4264_s11 = scalar_lea.hbm %s4571_s3, 5120 }
  0x15   :  { %s51_s8 = sshll.u32 %s4385_s7, 4  ;;  %p4265_p8 = scmp.ne.s32.totalorder %s4571_s3, %s4264_s11  ;;  %s52_s8 = int_to_ptr.vmem [resolvable:$true] %s51_s8 }
  0x16   :  { %p4268_p9 = scmp.lt.u32.totalorder %s4264_s11, %s4571_s3 }
  0x18   :  { %p4270_p10 = pnand %p4268_p9, %p4265_p8 }
  0x1a   :  { %4273 = shalt.err (!%p4270_p10)
}
  0x1b   :  { %s4274_s16 = scalar_lea.vmem %s52_s8, 5120  ;;  %p4279_p12 = scmp.lt.s32.totalorder %s52_s8, %s52_s8 }
  0x1c   :  { %p4275_p11 = scmp.ne.s32.totalorder %s52_s8, %s4274_s16  ;;  %p4280_p13 = scmp.lt.s32.totalorder %s4274_s16, %s4274_s16 }
  0x1e   :  { %p4281_p0 = por %p4280_p13, %p4279_p12 }
  0x20   :  { %p4282_p1 = pnand %p4281_p0, %p4275_p11 }
  0x22   :  { %4285 = shalt.err (!%p4282_p1)
}
  0x23   :  { %s4386_s1 = smov 64   ;;  %s4387_s17 = smov 4  }
  0x24   :  { %57 = dma.hbm_to_vmem [thread:$0]  %s4571_s3, 5120, %s52_s8, [#allocation11], %s4386_s1, %s4386_s1, %s4387_s17  }
  0x25   :  { %s4388_s20 = smov [#allocation4]   ;;  %s4389_s22 = smov [#allocation9]  }
  0x26   :  { %s20_s21 = sshll.u32 %s4388_s20, 4  ;;  %s42_s23 = sshll.u32 %s4389_s22, 4  ;;  %s21_s21 = int_to_ptr.vmem [resolvable:$true] %s20_s21  ;;  %s43_s23 = int_to_ptr.vmem [resolvable:$true] %s42_s23 }
  0x27   :  { %s4286_s26 = scalar_lea.hbm %s4568_s0, 512 }
  0x28   :  { %p4287_p2 = scmp.ne.s32.totalorder %s4568_s0, %s4286_s26  ;;  %p4290_p3 = scmp.lt.u32.totalorder %s4286_s26, %s4568_s0 }
  0x2a   :  { %p4292_p4 = pnand %p4290_p3, %p4287_p2 }
  0x2c   :  { %4295 = shalt.err (!%p4292_p4)
}
  0x2d   :  { %s4296_s3 = scalar_lea.vmem %s21_s21, 512  ;;  %p4301_p6 = scmp.lt.s32.totalorder %s21_s21, %s21_s21 }
  0x2e   :  { %p4297_p5 = scmp.ne.s32.totalorder %s21_s21, %s4296_s3  ;;  %p4302_p7 = scmp.lt.s32.totalorder %s4296_s3, %s4296_s3 }
  0x30   :  { %p4303_p8 = por %p4302_p7, %p4301_p6 }
  0x32   :  { %p4304_p9 = pnand %p4303_p8, %p4297_p5 }
  0x34   :  { %4307 = shalt.err (!%p4304_p9)
}
  0x35   :  { %23 = dma.hbm_to_vmem [thread:$0]  %s4568_s0, 512, %s21_s21, [#allocation5]  }
  0x36   :  { %s4308_s10 = scalar_lea.hbm %s4570_s2, 80 }
  0x37   :  { %p4309_p10 = scmp.ne.s32.totalorder %s4570_s2, %s4308_s10  ;;  %p4312_p11 = scmp.lt.u32.totalorder %s4308_s10, %s4570_s2 }
  0x39   :  { %p4314_p12 = pnand %p4312_p11, %p4309_p10 }
  0x3b   :  { %4317 = shalt.err (!%p4314_p12)
}
  0x3c   :  { %s4318_s15 = scalar_lea.vmem %s43_s23, 80  ;;  %s4322_s16 = scalar_lea.vmem %s43_s23, 96 }
  0x3d   :  { %p4319_p13 = scmp.ne.s32.totalorder %s43_s23, %s4318_s15  ;;  %p4323_p0 = scmp.lt.s32.totalorder %s43_s23, %s43_s23 }
  0x3e   :  { %p4324_p1 = scmp.lt.s32.totalorder %s4322_s16, %s4318_s15 }
  0x40   :  { %p4325_p2 = por %p4324_p1, %p4323_p0 }
  0x42   :  { %p4326_p3 = pnand %p4325_p2, %p4319_p13 }
  0x44   :  { %4329 = shalt.err (!%p4326_p3)
}
  0x45   :  { %45 = dma.hbm_to_vmem [thread:$0]  %s4570_s2, 80, %s43_s23, [#allocation8]  }
  0x46   :  { %s4390_s17 = smov [#allocation12]   ;;  %s4330_s21 = scalar_lea.hbm %s4572_s4, 16 }
  0x47   :  { %s64_s18 = sshll.u32 %s4390_s17, 4  ;;  %p4331_p4 = scmp.ne.s32.totalorder %s4572_s4, %s4330_s21  ;;  %s65_s18 = int_to_ptr.vmem [resolvable:$true] %s64_s18 }
  0x48   :  { %p4334_p5 = scmp.lt.u32.totalorder %s4330_s21, %s4572_s4 }
  0x4a   :  { %p4336_p6 = pnand %p4334_p5, %p4331_p4 }
  0x4c   :  { %4339 = shalt.err (!%p4336_p6)
}
  0x4d   :  { %s4340_s27 = scalar_lea.vmem %s65_s18, 16  ;;  %s4344_s2 = scalar_lea.vmem %s65_s18, 32 }
  0x4e   :  { %p4341_p7 = scmp.ne.s32.totalorder %s65_s18, %s4340_s27  ;;  %p4345_p8 = scmp.lt.s32.totalorder %s65_s18, %s65_s18 }
  0x4f   :  { %p4346_p9 = scmp.lt.s32.totalorder %s4344_s2, %s4340_s27 }
  0x51   :  { %p4347_p10 = por %p4346_p9, %p4345_p8 }
  0x53   :  { %p4348_p11 = pnand %p4347_p10, %p4341_p7 }
  0x55   :  { %4351 = shalt.err (!%p4348_p11)
}
  0x56   :  { %67 = dma.hbm_to_vmem [thread:$0]  %s4572_s4, 16, %s65_s18, [#allocation11]  }
  0x57   :  { %4374 = dma.done.wait [#allocation5], 512  }
  0x58   :  { %4375 = vsyncadd [#allocation5], 4294966784 }
  0x59   :  { %4376 = dma.done.wait [#allocation8], 41040  }
  0x5a   :  { %4377 = vsyncadd [#allocation8], 4294926256 }
  0x5b   :  { %4378 = dma.done.wait [#allocation11], 5136  }
  0x5c   :  { %4379 = vsyncadd [#allocation11], 4294962160  ;;  %v3746_v0 = vld [vmem:[#allocation7 + $0x4] ss:$20 sps:$4 sm:$0xff]   ;;  %v3750_v2 = vld [vmem:[#allocation7] ss:$20 sps:$4 sm:$0xff]  }
  0x5d   :  { %v3748_v1 = vld [vmem:[#allocation7 + $0x284] ss:$20 sps:$4 sm:$0xff]   ;;  %2184 = vmatprep.subr.bf16.mxu0 %v3746_v0  ;;  %v3751_v3 = vld [vmem:[#allocation7 + $0x280] ss:$20 sps:$4 sm:$0xff]   ;;  %v3756_v6 = vld [vmem:[#allocation7 + $0x28] ss:$20 sps:$4 sm:$0xff]  }
  0x5e   :  { %2225 = vmatprep.subr.bf16.mxu1 %v3748_v1  ;;  %v3752_v4 = vld [vmem:[#allocation7 + $0x2c] ss:$20 sps:$4 sm:$0xff]   ;;  %2185 = vmatpush1.bf16.msra.mxu0 %v3750_v2  ;;  %v3757_v7 = vld [vmem:[#allocation7 + $0x2a8] ss:$20 sps:$4 sm:$0xff]   ;;  %v3762_v10 = vld [vmem:[#allocation7 + $0x50] ss:$20 sps:$4 sm:$0xff]  }
  0x5f   :  { %2226 = vmatpush1.bf16.msra.mxu1 %v3751_v3  ;;  %v3754_v5 = vld [vmem:[#allocation7 + $0x2ac] ss:$20 sps:$4 sm:$0xff]   ;;  %2186 = vmatprep.subr.bf16.mxu0 %v3752_v4  ;;  %v3758_v8 = vld [vmem:[#allocation7 + $0x54] ss:$20 sps:$4 sm:$0xff]   ;;  %v3763_v11 = vld [vmem:[#allocation7 + $0x2d0] ss:$20 sps:$4 sm:$0xff]  }
  0x60   :  { %2227 = vmatprep.subr.bf16.mxu1 %v3754_v5  ;;  %v3760_v9 = vld [vmem:[#allocation7 + $0x2d4] ss:$20 sps:$4 sm:$0xff]   ;;  %v3764_v12 = vld [vmem:[#allocation7 + $0x7c] ss:$20 sps:$4 sm:$0xff]   ;;  %v3768_v14 = vld [vmem:[#allocation7 + $0x78] ss:$20 sps:$4 sm:$0xff]  }
  0x61   :  { %v3766_v13 = vld [vmem:[#allocation7 + $0x2fc] ss:$20 sps:$4 sm:$0xff]   ;;  %v3769_v15 = vld [vmem:[#allocation7 + $0x2f8] ss:$20 sps:$4 sm:$0xff]   ;;  %v3774_v18 = vld [vmem:[#allocation7 + $0xa0] ss:$20 sps:$4 sm:$0xff]  }
  0x62   :  { %2187 = vmatpush1.bf16.msra.mxu0 %v3756_v6  ;;  %v3770_v16 = vld [vmem:[#allocation7 + $0xa4] ss:$20 sps:$4 sm:$0xff]   ;;  %v3775_v19 = vld [vmem:[#allocation7 + $0x320] ss:$20 sps:$4 sm:$0xff]   ;;  %v3780_v22 = vld [vmem:[#allocation7 + $0xc8] ss:$20 sps:$4 sm:$0xff]  }
  0x63   :  { %2228 = vmatpush1.bf16.msra.mxu1 %v3757_v7  ;;  %2188 = vmatprep.subr.bf16.mxu0 %v3758_v8  ;;  %v3772_v17 = vld [vmem:[#allocation7 + $0x324] ss:$20 sps:$4 sm:$0xff]   ;;  %v3776_v20 = vld [vmem:[#allocation7 + $0xcc] ss:$20 sps:$4 sm:$0xff]   ;;  %v3781_v23 = vld [vmem:[#allocation7 + $0x348] ss:$20 sps:$4 sm:$0xff]  }
  0x64   :  { %2229 = vmatprep.subr.bf16.mxu1 %v3760_v9  ;;  %v3778_v21 = vld [vmem:[#allocation7 + $0x34c] ss:$20 sps:$4 sm:$0xff]   ;;  %v3782_v24 = vld [vmem:[#allocation7 + $0xf4] ss:$20 sps:$4 sm:$0xff]   ;;  %v3786_v26 = vld [vmem:[#allocation7 + $0xf0] ss:$20 sps:$4 sm:$0xff]  }
  0x65   :  { %v3784_v25 = vld [vmem:[#allocation7 + $0x374] ss:$20 sps:$4 sm:$0xff]   ;;  %v3787_v27 = vld [vmem:[#allocation7 + $0x370] ss:$20 sps:$4 sm:$0xff]   ;;  %v3792_v30 = vld [vmem:[#allocation7 + $0x118] ss:$20 sps:$4 sm:$0xff]  }
  0x66   :  { %2189 = vmatpush1.bf16.msra.mxu0 %v3762_v10  ;;  %v3788_v28 = vld [vmem:[#allocation7 + $0x11c] ss:$20 sps:$4 sm:$0xff]   ;;  %v3793_v31 = vld [vmem:[#allocation7 + $0x398] ss:$20 sps:$4 sm:$0xff]   ;;  %v3798_v34 = vld [vmem:[#allocation7 + $0x140] ss:$20 sps:$4 sm:$0xff]  }
  0x67   :  { %2230 = vmatpush1.bf16.msra.mxu1 %v3763_v11  ;;  %2190 = vmatprep.subr.bf16.mxu0 %v3764_v12  ;;  %v3790_v29 = vld [vmem:[#allocation7 + $0x39c] ss:$20 sps:$4 sm:$0xff]   ;;  %v3794_v32 = vld [vmem:[#allocation7 + $0x144] ss:$20 sps:$4 sm:$0xff]   ;;  %v3799_v35 = vld [vmem:[#allocation7 + $0x3c0] ss:$20 sps:$4 sm:$0xff]  }
  0x68   :  { %2231 = vmatprep.subr.bf16.mxu1 %v3766_v13  ;;  %v3796_v33 = vld [vmem:[#allocation7 + $0x3c4] ss:$20 sps:$4 sm:$0xff]   ;;  %v3800_v36 = vld [vmem:[#allocation7 + $0x16c] ss:$20 sps:$4 sm:$0xff]   ;;  %v3804_v38 = vld [vmem:[#allocation7 + $0x168] ss:$20 sps:$4 sm:$0xff]  }
  0x69   :  { %v3802_v37 = vld [vmem:[#allocation7 + $0x3ec] ss:$20 sps:$4 sm:$0xff]   ;;  %v3805_v39 = vld [vmem:[#allocation7 + $0x3e8] ss:$20 sps:$4 sm:$0xff]   ;;  %v3810_v42 = vld [vmem:[#allocation7 + $0x190] ss:$20 sps:$4 sm:$0xff]  }
  0x6a   :  { %2191 = vmatpush1.bf16.msra.mxu0 %v3768_v14  ;;  %v3806_v40 = vld [vmem:[#allocation7 + $0x194] ss:$20 sps:$4 sm:$0xff]   ;;  %v3811_v43 = vld [vmem:[#allocation7 + $0x410] ss:$20 sps:$4 sm:$0xff]   ;;  %v3816_v49 = vld [vmem:[#allocation7 + $0x1b8] ss:$20 sps:$4 sm:$0xff]  }
  0x6b   :  { %2232 = vmatpush1.bf16.msra.mxu1 %v3769_v15  ;;  %2192 = vmatprep.subr.bf16.mxu0 %v3770_v16  ;;  %v3808_v41 = vld [vmem:[#allocation7 + $0x414] ss:$20 sps:$4 sm:$0xff]   ;;  %v3812_v44 = vld [vmem:[#allocation7 + $0x1bc] ss:$20 sps:$4 sm:$0xff]   ;;  %v104_v46 = vld [vmem:[#allocation4] sm:$0xff]  ;;  %vm4392_vm0 = vmmov 0  }
  0x6c   :  { %2233 = vmatprep.subr.bf16.mxu1 %v3772_v17  ;;  %v3814_v45 = vld [vmem:[#allocation7 + $0x43c] ss:$20 sps:$4 sm:$0xff]   ;;  %v4484_v47 = vcombine.high %v104_v46, %v104_v46  ;;  %v105_v48 = vld [vmem:[#allocation4 + $0x8] sm:$0xff]  ;;  %v3818_v52 = vld [vmem:[#allocation7 + $0x1e4] ss:$20 sps:$4 sm:$0xff]   ;;  %v4490_v6 = vcombine.low %v104_v46, %v104_v46  ;;  %s4393_s4 = smov [#allocation13]  }
  0x6d   :  { %v3817_v50 = vld [vmem:[#allocation7 + $0x438] ss:$20 sps:$4 sm:$0xff]   ;;  %v4486_v51 = vcombine.high %v105_v48, %v105_v48  ;;  %v3822_v54 = vld [vmem:[#allocation7 + $0x1e0] ss:$20 sps:$4 sm:$0xff]   ;;  %v3828_v58 = vld [vmem:[#allocation7 + $0x208] ss:$20 sps:$4 sm:$0xff]   ;;  %v4492_v7 = vcombine.low %v105_v48, %v105_v48 }
  0x6e   :  { %2193 = vmatpush1.bf16.msra.mxu0 %v3774_v18  ;;  %v3820_v53 = vld [vmem:[#allocation7 + $0x464] ss:$20 sps:$4 sm:$0xff]   ;;  %2216 = vmatprep.mubr.bf16.mxu0 %v4484_v47  ;;  %v3823_v55 = vld [vmem:[#allocation7 + $0x460] ss:$20 sps:$4 sm:$0xff]   ;;  %v3829_v59 = vld [vmem:[#allocation7 + $0x488] ss:$20 sps:$4 sm:$0xff]  }
  0x6f   :  { %2234 = vmatpush1.bf16.msra.mxu1 %v3775_v19  ;;  %2194 = vmatprep.subr.bf16.mxu0 %v3776_v20  ;;  %v3824_v56 = vld [vmem:[#allocation7 + $0x20c] ss:$20 sps:$4 sm:$0xff]   ;;  %v3830_v60 = vld [vmem:[#allocation7 + $0x234] ss:$20 sps:$4 sm:$0xff]   ;;  %v3834_v62 = vld [vmem:[#allocation7 + $0x230] ss:$20 sps:$4 sm:$0xff]  }
  0x70   :  { %2235 = vmatprep.subr.bf16.mxu1 %v3778_v21  ;;  %2257 = vmatprep.mubr.bf16.mxu1 %v4486_v51  ;;  %v3826_v57 = vld [vmem:[#allocation7 + $0x48c] ss:$20 sps:$4 sm:$0xff]   ;;  %v3832_v61 = vld [vmem:[#allocation7 + $0x4b4] ss:$20 sps:$4 sm:$0xff]   ;;  %v3835_v63 = vld [vmem:[#allocation7 + $0x4b0] ss:$20 sps:$4 sm:$0xff]  }
  0x71   :  { %v3836_v0 = vld [vmem:[#allocation7 + $0x25c] ss:$20 sps:$4 sm:$0xff]   ;;  %v3840_v2 = vld [vmem:[#allocation7 + $0x258] ss:$20 sps:$4 sm:$0xff]   ;;  %v3846_v8 = vld [vmem:[#allocation7 + $0x500] ss:$20 sps:$4 sm:$0xff]  }
  0x72   :  { %2195 = vmatpush1.bf16.msra.mxu0 %v3780_v22  ;;  %v3838_v1 = vld [vmem:[#allocation7 + $0x4dc] ss:$20 sps:$4 sm:$0xff]   ;;  %v3841_v3 = vld [vmem:[#allocation7 + $0x4d8] ss:$20 sps:$4 sm:$0xff]   ;;  %v3849_v9 = vld [vmem:[#allocation7 + $0x780] ss:$20 sps:$4 sm:$0xff]  }
  0x73   :  { %2236 = vmatpush1.bf16.msra.mxu1 %v3781_v23  ;;  %2196 = vmatprep.subr.bf16.mxu0 %v3782_v24  ;;  %v3848_v4 = vld [vmem:[#allocation7 + $0x504] ss:$20 sps:$4 sm:$0xff]   ;;  %v3854_v10 = vld [vmem:[#allocation7 + $0x52c] ss:$20 sps:$4 sm:$0xff]   ;;  %v3852_v12 = vld [vmem:[#allocation7 + $0x528] ss:$20 sps:$4 sm:$0xff]  }
  0x74   :  { %2237 = vmatprep.subr.bf16.mxu1 %v3784_v25  ;;  %v3851_v5 = vld [vmem:[#allocation7 + $0x784] ss:$20 sps:$4 sm:$0xff]   ;;  %v3857_v11 = vld [vmem:[#allocation7 + $0x7ac] ss:$20 sps:$4 sm:$0xff]   ;;  %v3855_v13 = vld [vmem:[#allocation7 + $0x7a8] ss:$20 sps:$4 sm:$0xff]  }
  0x75   :  { %v3860_v14 = vld [vmem:[#allocation7 + $0x554] ss:$20 sps:$4 sm:$0xff]   ;;  %v3858_v16 = vld [vmem:[#allocation7 + $0x550] ss:$20 sps:$4 sm:$0xff]   ;;  %v3864_v20 = vld [vmem:[#allocation7 + $0x578] ss:$20 sps:$4 sm:$0xff]  }
  0x76   :  { %2197 = vmatpush1.bf16.msra.mxu0 %v3786_v26  ;;  %v3863_v15 = vld [vmem:[#allocation7 + $0x7d4] ss:$20 sps:$4 sm:$0xff]   ;;  %v3861_v17 = vld [vmem:[#allocation7 + $0x7d0] ss:$20 sps:$4 sm:$0xff]   ;;  %v3867_v21 = vld [vmem:[#allocation7 + $0x7f8] ss:$20 sps:$4 sm:$0xff]  }
  0x77   :  { %2238 = vmatpush1.bf16.msra.mxu1 %v3787_v27  ;;  %2198 = vmatprep.subr.bf16.mxu0 %v3788_v28  ;;  %v3866_v18 = vld [vmem:[#allocation7 + $0x57c] ss:$20 sps:$4 sm:$0xff]   ;;  %v3872_v22 = vld [vmem:[#allocation7 + $0x5a4] ss:$20 sps:$4 sm:$0xff]   ;;  %v3870_v24 = vld [vmem:[#allocation7 + $0x5a0] ss:$20 sps:$4 sm:$0xff]  }
  0x78   :  { %2239 = vmatprep.subr.bf16.mxu1 %v3790_v29  ;;  %v3869_v19 = vld [vmem:[#allocation7 + $0x7fc] ss:$20 sps:$4 sm:$0xff]   ;;  %v3875_v23 = vld [vmem:[#allocation7 + $0x824] ss:$20 sps:$4 sm:$0xff]   ;;  %v3873_v25 = vld [vmem:[#allocation7 + $0x820] ss:$20 sps:$4 sm:$0xff]  }
  0x79   :  { %v3878_v26 = vld [vmem:[#allocation7 + $0x5cc] ss:$20 sps:$4 sm:$0xff]   ;;  %v3876_v28 = vld [vmem:[#allocation7 + $0x5c8] ss:$20 sps:$4 sm:$0xff]   ;;  %s3193_s29 = sshll.u32 %s4393_s4, 4  ;;  %s3194_s29 = int_to_ptr.vmem [resolvable:$true] %s3193_s29 }
  0x7a   :  { %2199 = vmatpush1.bf16.msra.mxu0 %v3792_v30  ;;  %v3881_v27 = vld [vmem:[#allocation7 + $0x84c] ss:$20 sps:$4 sm:$0xff]   ;;  %v3879_v29 = vld [vmem:[#allocation7 + $0x848] ss:$20 sps:$4 sm:$0xff]   ;;  %s4352_s30 = scalar_lea.vmem %s3194_s29, 128  ;;  %p4357_p13 = scmp.lt.s32.totalorder %s3194_s29, %s3194_s29 }
  0x7b   :  { %2240 = vmatpush1.bf16.msra.mxu1 %v3793_v31  ;;  %2200 = vmatprep.subr.bf16.mxu0 %v3794_v32  ;;  %v3884_v30 = vld [vmem:[#allocation7 + $0x5f4] ss:$20 sps:$4 sm:$0xff]   ;;  %v3902_v46 = vld [vmem:[#allocation7 + $0x66c] ss:$20 sps:$4 sm:$0xff]   ;;  %p4353_p12 = scmp.ne.s32.totalorder %s3194_s29, %s4352_s30  ;;  %p4358_p0 = scmp.lt.s32.totalorder %s4352_s30, %s4352_s30 }
  0x7c   :  { %2241 = vmatprep.subr.bf16.mxu1 %v3796_v33  ;;  %v3887_v31 = vld [vmem:[#allocation7 + $0x874] ss:$20 sps:$4 sm:$0xff]   ;;  %v4498_v33 = vld [vmem:[#allocation4 + $0x18] sm:$0xff]  ;;  %v3905_v48 = vld [vmem:[#allocation7 + $0x8ec] ss:$20 sps:$4 sm:$0xff]  }
  0x7d   :  { %v4496_v32 = vld [vmem:[#allocation4 + $0x10] sm:$0xff]  ;;  %p4359_p1 = por %p4358_p0, %p4357_p13 }
  0x7e   :  { %2201 = vmatpush1.bf16.msra.mxu0 %v3798_v34  ;;  %v3882_v34 = vld [vmem:[#allocation7 + $0x5f0] ss:$20 sps:$4 sm:$0xff]  }
  0x7f   :  { %2242 = vmatpush1.bf16.msra.mxu1 %v3799_v35  ;;  %2202 = vmatprep.subr.bf16.mxu0 %v3800_v36  ;;  %v3885_v35 = vld [vmem:[#allocation7 + $0x870] ss:$20 sps:$4 sm:$0xff]   ;;  %v4502_v36 = vcombine.high %v4496_v32, %v4496_v32  ;;  %p4360_p2 = pnand %p4359_p1, %p4353_p12 }
  0x80   :  { %2243 = vmatprep.subr.bf16.mxu1 %v3802_v37  ;;  %v4506_v37 = vcombine.high %v4498_v33, %v4498_v33 }
  0x82   :  { %2203 = vmatpush1.bf16.msra.mxu0 %v3804_v38  ;;  %v3890_v38 = vld [vmem:[#allocation7 + $0x61c] ss:$20 sps:$4 sm:$0xff]  }
  0x83   :  { %2244 = vmatpush1.bf16.msra.mxu1 %v3805_v39  ;;  %2204 = vmatprep.subr.bf16.mxu0 %v3806_v40  ;;  %v3893_v39 = vld [vmem:[#allocation7 + $0x89c] ss:$20 sps:$4 sm:$0xff]   ;;  %v3888_v40 = vld [vmem:[#allocation7 + $0x618] ss:$20 sps:$4 sm:$0xff]  }
  0x84   :  { %2245 = vmatprep.subr.bf16.mxu1 %v3808_v41  ;;  %v3891_v41 = vld [vmem:[#allocation7 + $0x898] ss:$20 sps:$4 sm:$0xff]  }
  0x86   :  { %2205 = vmatpush1.bf16.msra.mxu0 %v3810_v42  ;;  %v3896_v42 = vld [vmem:[#allocation7 + $0x644] ss:$20 sps:$4 sm:$0xff]  }
  0x87   :  { %2246 = vmatpush1.bf16.msra.mxu1 %v3811_v43  ;;  %2206 = vmatprep.subr.bf16.mxu0 %v3812_v44  ;;  %v3899_v43 = vld [vmem:[#allocation7 + $0x8c4] ss:$20 sps:$4 sm:$0xff]   ;;  %v3894_v44 = vld [vmem:[#allocation7 + $0x640] ss:$20 sps:$4 sm:$0xff]  }
  0x88   :  { %2247 = vmatprep.subr.bf16.mxu1 %v3814_v45  ;;  %v3897_v45 = vld [vmem:[#allocation7 + $0x8c0] ss:$20 sps:$4 sm:$0xff]  }
  0x8a   :  { %2207 = vmatpush1.bf16.msra.mxu0 %v3816_v49  ;;  %v3900_v49 = vld [vmem:[#allocation7 + $0x668] ss:$20 sps:$4 sm:$0xff]  }
  0x8b   :  { %2248 = vmatpush1.bf16.msra.mxu1 %v3817_v50  ;;  %2208 = vmatprep.subr.bf16.mxu0 %v3818_v52  ;;  %v3903_v50 = vld [vmem:[#allocation7 + $0x8e8] ss:$20 sps:$4 sm:$0xff]  }
  0x8c   :  { %2249 = vmatprep.subr.bf16.mxu1 %v3820_v53  ;;  %v3908_v52 = vld [vmem:[#allocation7 + $0x694] ss:$20 sps:$4 sm:$0xff]  }
  0x8d   :  { %v3911_v53 = vld [vmem:[#allocation7 + $0x914] ss:$20 sps:$4 sm:$0xff]  }
  0x8e   :  { %2209 = vmatpush1.bf16.msra.mxu0 %v3822_v54  ;;  %v3906_v54 = vld [vmem:[#allocation7 + $0x690] ss:$20 sps:$4 sm:$0xff]  }
  0x8f   :  { %2250 = vmatpush1.bf16.msra.mxu1 %v3823_v55  ;;  %2210 = vmatprep.subr.bf16.mxu0 %v3824_v56  ;;  %v3909_v55 = vld [vmem:[#allocation7 + $0x910] ss:$20 sps:$4 sm:$0xff]  }
  0x90   :  { %2251 = vmatprep.subr.bf16.mxu1 %v3826_v57  ;;  %v3914_v56 = vld [vmem:[#allocation7 + $0x6bc] ss:$20 sps:$4 sm:$0xff]  }
  0x91   :  { %v3917_v57 = vld [vmem:[#allocation7 + $0x93c] ss:$20 sps:$4 sm:$0xff]  }
  0x92   :  { %2211 = vmatpush1.bf16.msra.mxu0 %v3828_v58  ;;  %v3912_v58 = vld [vmem:[#allocation7 + $0x6b8] ss:$20 sps:$4 sm:$0xff]  }
  0x93   :  { %2252 = vmatpush1.bf16.msra.mxu1 %v3829_v59  ;;  %2212 = vmatprep.subr.bf16.mxu0 %v3830_v60  ;;  %v3915_v59 = vld [vmem:[#allocation7 + $0x938] ss:$20 sps:$4 sm:$0xff]  }
  0x94   :  { %2253 = vmatprep.subr.bf16.mxu1 %v3832_v61  ;;  %v3920_v60 = vld [vmem:[#allocation7 + $0x6e4] ss:$20 sps:$4 sm:$0xff]  }
  0x95   :  { %v3923_v61 = vld [vmem:[#allocation7 + $0x964] ss:$20 sps:$4 sm:$0xff]  }
  0x96   :  { %2213 = vmatpush1.bf16.msra.mxu0 %v3834_v62  ;;  %v3918_v62 = vld [vmem:[#allocation7 + $0x6e0] ss:$20 sps:$4 sm:$0xff]  }
  0x97   :  { %2254 = vmatpush1.bf16.msra.mxu1 %v3835_v63  ;;  %2214 = vmatprep.subr.bf16.mxu0 %v3836_v0  ;;  %v3921_v63 = vld [vmem:[#allocation7 + $0x960] ss:$20 sps:$4 sm:$0xff]  }
  0x98   :  { %2255 = vmatprep.subr.bf16.mxu1 %v3838_v1  ;;  %v3926_v0 = vld [vmem:[#allocation7 + $0x70c] ss:$20 sps:$4 sm:$0xff]  }
  0x99   :  { %v3929_v1 = vld [vmem:[#allocation7 + $0x98c] ss:$20 sps:$4 sm:$0xff]  }
  0x9a   :  { %2215 = vmatpush1.bf16.msra.mxu0 %v3840_v2  ;;  %v3924_v2 = vld [vmem:[#allocation7 + $0x708] ss:$20 sps:$4 sm:$0xff]  }
  0x9b   :  { %2256 = vmatpush1.bf16.msra.mxu1 %v3841_v3  ;;  %2266 = vmatprep.subr.bf16.mxu0 %v3848_v4  ;;  %v3927_v3 = vld [vmem:[#allocation7 + $0x988] ss:$20 sps:$4 sm:$0xff]  }
  0x9c   :  { %2307 = vmatprep.subr.bf16.mxu1 %v3851_v5  ;;  %v3932_v4 = vld [vmem:[#allocation7 + $0x734] ss:$20 sps:$4 sm:$0xff]  }
  0x9d   :  { %2217 = vmatmul.mubr.bf16.vlgmr.msra.gmra.mrb[0].mxu0 %v4490_v6  ;;  %v3935_v5 = vld [vmem:[#allocation7 + $0x9b4] ss:$20 sps:$4 sm:$0xff]  }
  0x9e   :  { %2258 = vmatmul.mubr.bf16.vlgmr.msra.gmra.mrb[0].mxu1 %v4492_v7  ;;  %2267 = vmatpush1.bf16.msra.mxu0 %v3846_v8  ;;  %v3930_v8 = vld [vmem:[#allocation7 + $0x730] ss:$20 sps:$4 sm:$0xff]  }
  0x9f   :  { %2308 = vmatpush1.bf16.msra.mxu1 %v3849_v9  ;;  %2268 = vmatprep.subr.bf16.mxu0 %v3854_v10  ;;  %v3933_v9 = vld [vmem:[#allocation7 + $0x9b0] ss:$20 sps:$4 sm:$0xff]  }
  0xa0   :  { %2309 = vmatprep.subr.bf16.mxu1 %v3857_v11  ;;  %2298 = vmatprep.mubr.bf16.mxu0 %v4502_v36  ;;  %v3938_v10 = vld [vmem:[#allocation7 + $0x75c] ss:$20 sps:$4 sm:$0xff]  }
  0xa1   :  { %2339 = vmatprep.mubr.bf16.mxu1 %v4506_v37  ;;  %v3941_v11 = vld [vmem:[#allocation7 + $0x9dc] ss:$20 sps:$4 sm:$0xff]  }
  0xa2   :  { %2269 = vmatpush1.bf16.msra.mxu0 %v3852_v12  ;;  %v3936_v12 = vld [vmem:[#allocation7 + $0x758] ss:$20 sps:$4 sm:$0xff]  }
  0xa3   :  { %2310 = vmatpush1.bf16.msra.mxu1 %v3855_v13  ;;  %2270 = vmatprep.subr.bf16.mxu0 %v3860_v14  ;;  %v3939_v13 = vld [vmem:[#allocation7 + $0x9d8] ss:$20 sps:$4 sm:$0xff]  }
  0xa4   :  { %2311 = vmatprep.subr.bf16.mxu1 %v3863_v15  ;;  %v3948_v14 = vld [vmem:[#allocation7 + $0xc] ss:$20 sps:$4 sm:$0xff]  }
  0xa5   :  { %v3951_v15 = vld [vmem:[#allocation7 + $0x28c] ss:$20 sps:$4 sm:$0xff]  }
  0xa6   :  { %2271 = vmatpush1.bf16.msra.mxu0 %v3858_v16  ;;  %v4512_v16 = vcombine.low %v4496_v32, %v4496_v32  ;;  %v3972_v32 = vld [vmem:[#allocation7 + $0xac] ss:$20 sps:$4 sm:$0xff]  }
  0xa7   :  { %2312 = vmatpush1.bf16.msra.mxu1 %v3861_v17  ;;  %2272 = vmatprep.subr.bf16.mxu0 %v3866_v18  ;;  %v4516_v17 = vcombine.low %v4498_v33, %v4498_v33  ;;  %v3946_v18 = vld [vmem:[#allocation7 + $0x8] ss:$20 sps:$4 sm:$0xff]   ;;  %v3975_v33 = vld [vmem:[#allocation7 + $0x32c] ss:$20 sps:$4 sm:$0xff]  }
  0xa8   :  { %2313 = vmatprep.subr.bf16.mxu1 %v3869_v19  ;;  %v3949_v19 = vld [vmem:[#allocation7 + $0x288] ss:$20 sps:$4 sm:$0xff]  }
  0xaa   :  { %2273 = vmatpush1.bf16.msra.mxu0 %v3864_v20  ;;  %v3954_v20 = vld [vmem:[#allocation7 + $0x34] ss:$20 sps:$4 sm:$0xff]  }
  0xab   :  { %2314 = vmatpush1.bf16.msra.mxu1 %v3867_v21  ;;  %2274 = vmatprep.subr.bf16.mxu0 %v3872_v22  ;;  %v3957_v21 = vld [vmem:[#allocation7 + $0x2b4] ss:$20 sps:$4 sm:$0xff]   ;;  %v3952_v22 = vld [vmem:[#allocation7 + $0x30] ss:$20 sps:$4 sm:$0xff]  }
  0xac   :  { %2315 = vmatprep.subr.bf16.mxu1 %v3875_v23  ;;  %v3955_v23 = vld [vmem:[#allocation7 + $0x2b0] ss:$20 sps:$4 sm:$0xff]  }
  0xae   :  { %2275 = vmatpush1.bf16.msra.mxu0 %v3870_v24  ;;  %v3960_v24 = vld [vmem:[#allocation7 + $0x5c] ss:$20 sps:$4 sm:$0xff]  }
  0xaf   :  { %2316 = vmatpush1.bf16.msra.mxu1 %v3873_v25  ;;  %2276 = vmatprep.subr.bf16.mxu0 %v3878_v26  ;;  %v3963_v25 = vld [vmem:[#allocation7 + $0x2dc] ss:$20 sps:$4 sm:$0xff]   ;;  %v3958_v26 = vld [vmem:[#allocation7 + $0x58] ss:$20 sps:$4 sm:$0xff]  }
  0xb0   :  { %2317 = vmatprep.subr.bf16.mxu1 %v3881_v27  ;;  %v3961_v27 = vld [vmem:[#allocation7 + $0x2d8] ss:$20 sps:$4 sm:$0xff]  }
  0xb2   :  { %2277 = vmatpush1.bf16.msra.mxu0 %v3876_v28  ;;  %v3966_v28 = vld [vmem:[#allocation7 + $0x84] ss:$20 sps:$4 sm:$0xff]  }
  0xb3   :  { %2318 = vmatpush1.bf16.msra.mxu1 %v3879_v29  ;;  %2278 = vmatprep.subr.bf16.mxu0 %v3884_v30  ;;  %v3969_v29 = vld [vmem:[#allocation7 + $0x304] ss:$20 sps:$4 sm:$0xff]   ;;  %v3964_v30 = vld [vmem:[#allocation7 + $0x80] ss:$20 sps:$4 sm:$0xff]  }
  0xb4   :  { %2319 = vmatprep.subr.bf16.mxu1 %v3887_v31  ;;  %v3967_v31 = vld [vmem:[#allocation7 + $0x300] ss:$20 sps:$4 sm:$0xff]  }
  0xb6   :  { %2279 = vmatpush1.bf16.msra.mxu0 %v3882_v34  ;;  %v3970_v34 = vld [vmem:[#allocation7 + $0xa8] ss:$20 sps:$4 sm:$0xff]  }
  0xb7   :  { %2320 = vmatpush1.bf16.msra.mxu1 %v3885_v35  ;;  %2280 = vmatprep.subr.bf16.mxu0 %v3890_v38  ;;  %v3973_v35 = vld [vmem:[#allocation7 + $0x328] ss:$20 sps:$4 sm:$0xff]  }
  0xb8   :  { %2321 = vmatprep.subr.bf16.mxu1 %v3893_v39  ;;  %v3978_v38 = vld [vmem:[#allocation7 + $0xd4] ss:$20 sps:$4 sm:$0xff]  }
  0xb9   :  { %v3981_v39 = vld [vmem:[#allocation7 + $0x354] ss:$20 sps:$4 sm:$0xff]  }
  0xba   :  { %2281 = vmatpush1.bf16.msra.mxu0 %v3888_v40  ;;  %v3976_v40 = vld [vmem:[#allocation7 + $0xd0] ss:$20 sps:$4 sm:$0xff]  }
  0xbb   :  { %2322 = vmatpush1.bf16.msra.mxu1 %v3891_v41  ;;  %2282 = vmatprep.subr.bf16.mxu0 %v3896_v42  ;;  %v3979_v41 = vld [vmem:[#allocation7 + $0x350] ss:$20 sps:$4 sm:$0xff]  }
  0xbc   :  { %2323 = vmatprep.subr.bf16.mxu1 %v3899_v43  ;;  %v3984_v42 = vld [vmem:[#allocation7 + $0xfc] ss:$20 sps:$4 sm:$0xff]  }
  0xbd   :  { %v3987_v43 = vld [vmem:[#allocation7 + $0x37c] ss:$20 sps:$4 sm:$0xff]  }
  0xbe   :  { %2283 = vmatpush1.bf16.msra.mxu0 %v3894_v44  ;;  %v3982_v44 = vld [vmem:[#allocation7 + $0xf8] ss:$20 sps:$4 sm:$0xff]  }
  0xbf   :  { %2324 = vmatpush1.bf16.msra.mxu1 %v3897_v45  ;;  %2284 = vmatprep.subr.bf16.mxu0 %v3902_v46  ;;  %v3985_v45 = vld [vmem:[#allocation7 + $0x378] ss:$20 sps:$4 sm:$0xff]  }
  0xc0   :  { %2325 = vmatprep.subr.bf16.mxu1 %v3905_v48  ;;  %v3990_v46 = vld [vmem:[#allocation7 + $0x124] ss:$20 sps:$4 sm:$0xff]  }
  0xc1   :  { %v3993_v48 = vld [vmem:[#allocation7 + $0x3a4] ss:$20 sps:$4 sm:$0xff]  }
  0xc2   :  { %2285 = vmatpush1.bf16.msra.mxu0 %v3900_v49  ;;  %v3988_v49 = vld [vmem:[#allocation7 + $0x120] ss:$20 sps:$4 sm:$0xff]  }
  0xc3   :  { %2326 = vmatpush1.bf16.msra.mxu1 %v3903_v50  ;;  %2286 = vmatprep.subr.bf16.mxu0 %v3908_v52  ;;  %v3991_v50 = vld [vmem:[#allocation7 + $0x3a0] ss:$20 sps:$4 sm:$0xff]  }
  0xc4   :  { %2327 = vmatprep.subr.bf16.mxu1 %v3911_v53  ;;  %v3996_v52 = vld [vmem:[#allocation7 + $0x14c] ss:$20 sps:$4 sm:$0xff]  }
  0xc5   :  { %v3999_v53 = vld [vmem:[#allocation7 + $0x3cc] ss:$20 sps:$4 sm:$0xff]  }
  0xc6   :  { %2287 = vmatpush1.bf16.msra.mxu0 %v3906_v54  ;;  %v3994_v54 = vld [vmem:[#allocation7 + $0x148] ss:$20 sps:$4 sm:$0xff]  }
  0xc7   :  { %2328 = vmatpush1.bf16.msra.mxu1 %v3909_v55  ;;  %2288 = vmatprep.subr.bf16.mxu0 %v3914_v56  ;;  %v3997_v55 = vld [vmem:[#allocation7 + $0x3c8] ss:$20 sps:$4 sm:$0xff]  }
  0xc8   :  { %2329 = vmatprep.subr.bf16.mxu1 %v3917_v57  ;;  %v4002_v56 = vld [vmem:[#allocation7 + $0x174] ss:$20 sps:$4 sm:$0xff]  }
  0xc9   :  { %v4005_v57 = vld [vmem:[#allocation7 + $0x3f4] ss:$20 sps:$4 sm:$0xff]  }
  0xca   :  { %2289 = vmatpush1.bf16.msra.mxu0 %v3912_v58  ;;  %v4000_v58 = vld [vmem:[#allocation7 + $0x170] ss:$20 sps:$4 sm:$0xff]  }
  0xcb   :  { %2330 = vmatpush1.bf16.msra.mxu1 %v3915_v59  ;;  %2290 = vmatprep.subr.bf16.mxu0 %v3920_v60  ;;  %v4003_v59 = vld [vmem:[#allocation7 + $0x3f0] ss:$20 sps:$4 sm:$0xff]  }
  0xcc   :  { %2331 = vmatprep.subr.bf16.mxu1 %v3923_v61  ;;  %v4008_v60 = vld [vmem:[#allocation7 + $0x19c] ss:$20 sps:$4 sm:$0xff]  }
  0xcd   :  { %v4011_v61 = vld [vmem:[#allocation7 + $0x41c] ss:$20 sps:$4 sm:$0xff]  }
  0xce   :  { %2291 = vmatpush1.bf16.msra.mxu0 %v3918_v62  ;;  %v4006_v62 = vld [vmem:[#allocation7 + $0x198] ss:$20 sps:$4 sm:$0xff]  }
  0xcf   :  { %2332 = vmatpush1.bf16.msra.mxu1 %v3921_v63  ;;  %2292 = vmatprep.subr.bf16.mxu0 %v3926_v0  ;;  %v4009_v63 = vld [vmem:[#allocation7 + $0x418] ss:$20 sps:$4 sm:$0xff]  }
  0xd0   :  { %2333 = vmatprep.subr.bf16.mxu1 %v3929_v1  ;;  %v4014_v0 = vld [vmem:[#allocation7 + $0x1c4] ss:$20 sps:$4 sm:$0xff]  }
  0xd1   :  { %v4017_v1 = vld [vmem:[#allocation7 + $0x444] ss:$20 sps:$4 sm:$0xff]  }
  0xd2   :  { %2293 = vmatpush1.bf16.msra.mxu0 %v3924_v2  ;;  %v4012_v2 = vld [vmem:[#allocation7 + $0x1c0] ss:$20 sps:$4 sm:$0xff]  }
  0xd3   :  { %2334 = vmatpush1.bf16.msra.mxu1 %v3927_v3  ;;  %2294 = vmatprep.subr.bf16.mxu0 %v3932_v4  ;;  %v4015_v3 = vld [vmem:[#allocation7 + $0x440] ss:$20 sps:$4 sm:$0xff]  }
  0xd4   :  { %2335 = vmatprep.subr.bf16.mxu1 %v3935_v5  ;;  %v4020_v4 = vld [vmem:[#allocation7 + $0x1ec] ss:$20 sps:$4 sm:$0xff]  }
  0xd5   :  { %v4023_v5 = vld [vmem:[#allocation7 + $0x46c] ss:$20 sps:$4 sm:$0xff]  }
  0xd6   :  { %2295 = vmatpush1.bf16.msra.mxu0 %v3930_v8  ;;  %v4018_v8 = vld [vmem:[#allocation7 + $0x1e8] ss:$20 sps:$4 sm:$0xff]  }
  0xd7   :  { %2336 = vmatpush1.bf16.msra.mxu1 %v3933_v9  ;;  %2296 = vmatprep.subr.bf16.mxu0 %v3938_v10  ;;  %v4021_v9 = vld [vmem:[#allocation7 + $0x468] ss:$20 sps:$4 sm:$0xff]  }
  0xd8   :  { %2337 = vmatprep.subr.bf16.mxu1 %v3941_v11  ;;  %v4026_v10 = vld [vmem:[#allocation7 + $0x214] ss:$20 sps:$4 sm:$0xff]  }
  0xd9   :  { %v4029_v11 = vld [vmem:[#allocation7 + $0x494] ss:$20 sps:$4 sm:$0xff]  }
  0xda   :  { %2297 = vmatpush1.bf16.msra.mxu0 %v3936_v12  ;;  %v4024_v12 = vld [vmem:[#allocation7 + $0x210] ss:$20 sps:$4 sm:$0xff]  }
  0xdb   :  { %2338 = vmatpush1.bf16.msra.mxu1 %v3939_v13  ;;  %2348 = vmatprep.subr.bf16.mxu0 %v3948_v14  ;;  %v4027_v13 = vld [vmem:[#allocation7 + $0x490] ss:$20 sps:$4 sm:$0xff]  }
  0xdc   :  { %2389 = vmatprep.subr.bf16.mxu1 %v3951_v15  ;;  %v4032_v14 = vld [vmem:[#allocation7 + $0x23c] ss:$20 sps:$4 sm:$0xff]  }
  0xdd   :  { %2299 = vmatmul.mubr.bf16.vlgmr.msra.gmra.mrb[4].mxu0 %v4512_v16  ;;  %v4035_v15 = vld [vmem:[#allocation7 + $0x4bc] ss:$20 sps:$4 sm:$0xff]  }
  0xde   :  { %2340 = vmatmul.mubr.bf16.vlgmr.msra.gmra.mrb[4].mxu1 %v4516_v17  ;;  %2349 = vmatpush1.bf16.msra.mxu0 %v3946_v18  ;;  %v4030_v18 = vld [vmem:[#allocation7 + $0x238] ss:$20 sps:$4 sm:$0xff]  }
  0xdf   :  { %2390 = vmatpush1.bf16.msra.mxu1 %v3949_v19  ;;  %2350 = vmatprep.subr.bf16.mxu0 %v3954_v20  ;;  %v4033_v19 = vld [vmem:[#allocation7 + $0x4b8] ss:$20 sps:$4 sm:$0xff]  }
  0xe0   :  { %2391 = vmatprep.subr.bf16.mxu1 %v3957_v21  ;;  %2380 = vmatprep.mubr.bf16.mxu0 %v4484_v47  ;;  %v4038_v20 = vld [vmem:[#allocation7 + $0x264] ss:$20 sps:$4 sm:$0xff]  }
  0xe1   :  { %2421 = vmatprep.mubr.bf16.mxu1 %v4486_v51  ;;  %v4041_v21 = vld [vmem:[#allocation7 + $0x4e4] ss:$20 sps:$4 sm:$0xff]  }
  0xe2   :  { %2351 = vmatpush1.bf16.msra.mxu0 %v3952_v22  ;;  %v4036_v22 = vld [vmem:[#allocation7 + $0x260] ss:$20 sps:$4 sm:$0xff]  }
  0xe3   :  { %2392 = vmatpush1.bf16.msra.mxu1 %v3955_v23  ;;  %2352 = vmatprep.subr.bf16.mxu0 %v3960_v24  ;;  %v4039_v23 = vld [vmem:[#allocation7 + $0x4e0] ss:$20 sps:$4 sm:$0xff]  }
  0xe4   :  { %2393 = vmatprep.subr.bf16.mxu1 %v3963_v25  ;;  %v4044_v24 = vld [vmem:[#allocation7 + $0x50c] ss:$20 sps:$4 sm:$0xff]  }
  0xe5   :  { %v4047_v25 = vld [vmem:[#allocation7 + $0x78c] ss:$20 sps:$4 sm:$0xff]  }
  0xe6   :  { %2353 = vmatpush1.bf16.msra.mxu0 %v3958_v26  ;;  %v4042_v26 = vld [vmem:[#allocation7 + $0x508] ss:$20 sps:$4 sm:$0xff]  }
  0xe7   :  { %2394 = vmatpush1.bf16.msra.mxu1 %v3961_v27  ;;  %2354 = vmatprep.subr.bf16.mxu0 %v3966_v28  ;;  %v4045_v27 = vld [vmem:[#allocation7 + $0x788] ss:$20 sps:$4 sm:$0xff]  }
  0xe8   :  { %2395 = vmatprep.subr.bf16.mxu1 %v3969_v29  ;;  %v4050_v28 = vld [vmem:[#allocation7 + $0x534] ss:$20 sps:$4 sm:$0xff]  }
  0xe9   :  { %v4053_v29 = vld [vmem:[#allocation7 + $0x7b4] ss:$20 sps:$4 sm:$0xff]  }
  0xea   :  { %2355 = vmatpush1.bf16.msra.mxu0 %v3964_v30  ;;  %v4048_v30 = vld [vmem:[#allocation7 + $0x530] ss:$20 sps:$4 sm:$0xff]  }
  0xeb   :  { %2396 = vmatpush1.bf16.msra.mxu1 %v3967_v31  ;;  %2356 = vmatprep.subr.bf16.mxu0 %v3972_v32  ;;  %v4051_v31 = vld [vmem:[#allocation7 + $0x7b0] ss:$20 sps:$4 sm:$0xff]  }
  0xec   :  { %2397 = vmatprep.subr.bf16.mxu1 %v3975_v33  ;;  %v4056_v32 = vld [vmem:[#allocation7 + $0x55c] ss:$20 sps:$4 sm:$0xff]  }
  0xed   :  { %v4059_v33 = vld [vmem:[#allocation7 + $0x7dc] ss:$20 sps:$4 sm:$0xff]  }
  0xee   :  { %2357 = vmatpush1.bf16.msra.mxu0 %v3970_v34  ;;  %v4054_v34 = vld [vmem:[#allocation7 + $0x558] ss:$20 sps:$4 sm:$0xff]  }
  0xef   :  { %2398 = vmatpush1.bf16.msra.mxu1 %v3973_v35  ;;  %2358 = vmatprep.subr.bf16.mxu0 %v3978_v38  ;;  %v4057_v35 = vld [vmem:[#allocation7 + $0x7d8] ss:$20 sps:$4 sm:$0xff]  }
  0xf0   :  { %2399 = vmatprep.subr.bf16.mxu1 %v3981_v39  ;;  %v4062_v38 = vld [vmem:[#allocation7 + $0x584] ss:$20 sps:$4 sm:$0xff]  }
  0xf1   :  { %v4065_v39 = vld [vmem:[#allocation7 + $0x804] ss:$20 sps:$4 sm:$0xff]  }
  0xf2   :  { %2359 = vmatpush1.bf16.msra.mxu0 %v3976_v40  ;;  %v4060_v40 = vld [vmem:[#allocation7 + $0x580] ss:$20 sps:$4 sm:$0xff]  }
  0xf3   :  { %2400 = vmatpush1.bf16.msra.mxu1 %v3979_v41  ;;  %2360 = vmatprep.subr.bf16.mxu0 %v3984_v42  ;;  %v4063_v41 = vld [vmem:[#allocation7 + $0x800] ss:$20 sps:$4 sm:$0xff]  }
  0xf4   :  { %2401 = vmatprep.subr.bf16.mxu1 %v3987_v43  ;;  %v4068_v42 = vld [vmem:[#allocation7 + $0x5ac] ss:$20 sps:$4 sm:$0xff]  }
  0xf5   :  { %v4071_v43 = vld [vmem:[#allocation7 + $0x82c] ss:$20 sps:$4 sm:$0xff]  }
  0xf6   :  { %2361 = vmatpush1.bf16.msra.mxu0 %v3982_v44  ;;  %v4066_v44 = vld [vmem:[#allocation7 + $0x5a8] ss:$20 sps:$4 sm:$0xff]  }
  0xf7   :  { %2402 = vmatpush1.bf16.msra.mxu1 %v3985_v45  ;;  %2362 = vmatprep.subr.bf16.mxu0 %v3990_v46  ;;  %v4069_v45 = vld [vmem:[#allocation7 + $0x828] ss:$20 sps:$4 sm:$0xff]  }
  0xf8   :  { %2403 = vmatprep.subr.bf16.mxu1 %v3993_v48  ;;  %v4074_v46 = vld [vmem:[#allocation7 + $0x5d4] ss:$20 sps:$4 sm:$0xff]  }
  0xf9   :  { %v4077_v48 = vld [vmem:[#allocation7 + $0x854] ss:$20 sps:$4 sm:$0xff]  }
  0xfa   :  { %2363 = vmatpush1.bf16.msra.mxu0 %v3988_v49  ;;  %v4072_v49 = vld [vmem:[#allocation7 + $0x5d0] ss:$20 sps:$4 sm:$0xff]  }
  0xfb   :  { %2404 = vmatpush1.bf16.msra.mxu1 %v3991_v50  ;;  %2364 = vmatprep.subr.bf16.mxu0 %v3996_v52  ;;  %v4075_v50 = vld [vmem:[#allocation7 + $0x850] ss:$20 sps:$4 sm:$0xff]  }
  0xfc   :  { %2405 = vmatprep.subr.bf16.mxu1 %v3999_v53  ;;  %v4080_v52 = vld [vmem:[#allocation7 + $0x5fc] ss:$20 sps:$4 sm:$0xff]  }
  0xfd   :  { %v4083_v53 = vld [vmem:[#allocation7 + $0x87c] ss:$20 sps:$4 sm:$0xff]  }
  0xfe   :  { %2365 = vmatpush1.bf16.msra.mxu0 %v3994_v54  ;;  %v4078_v54 = vld [vmem:[#allocation7 + $0x5f8] ss:$20 sps:$4 sm:$0xff]  }
  0xff   :  { %2406 = vmatpush1.bf16.msra.mxu1 %v3997_v55  ;;  %2366 = vmatprep.subr.bf16.mxu0 %v4002_v56  ;;  %v4081_v55 = vld [vmem:[#allocation7 + $0x878] ss:$20 sps:$4 sm:$0xff]  }
 0x100   :  { %2407 = vmatprep.subr.bf16.mxu1 %v4005_v57  ;;  %v4086_v56 = vld [vmem:[#allocation7 + $0x624] ss:$20 sps:$4 sm:$0xff]  }
 0x101   :  { %v4089_v57 = vld [vmem:[#allocation7 + $0x8a4] ss:$20 sps:$4 sm:$0xff]  }
 0x102   :  { %2367 = vmatpush1.bf16.msra.mxu0 %v4000_v58  ;;  %v4084_v58 = vld [vmem:[#allocation7 + $0x620] ss:$20 sps:$4 sm:$0xff]  }
 0x103   :  { %2408 = vmatpush1.bf16.msra.mxu1 %v4003_v59  ;;  %2368 = vmatprep.subr.bf16.mxu0 %v4008_v60  ;;  %v4087_v59 = vld [vmem:[#allocation7 + $0x8a0] ss:$20 sps:$4 sm:$0xff]  }
 0x104   :  { %2409 = vmatprep.subr.bf16.mxu1 %v4011_v61  ;;  %v4092_v60 = vld [vmem:[#allocation7 + $0x64c] ss:$20 sps:$4 sm:$0xff]  }
 0x105   :  { %v4095_v61 = vld [vmem:[#allocation7 + $0x8cc] ss:$20 sps:$4 sm:$0xff]  }
 0x106   :  { %2369 = vmatpush1.bf16.msra.mxu0 %v4006_v62  ;;  %v4090_v62 = vld [vmem:[#allocation7 + $0x648] ss:$20 sps:$4 sm:$0xff]  }
 0x107   :  { %2410 = vmatpush1.bf16.msra.mxu1 %v4009_v63  ;;  %2370 = vmatprep.subr.bf16.mxu0 %v4014_v0  ;;  %v4093_v63 = vld [vmem:[#allocation7 + $0x8c8] ss:$20 sps:$4 sm:$0xff]  }
 0x108   :  { %2411 = vmatprep.subr.bf16.mxu1 %v4017_v1  ;;  %v4098_v0 = vld [vmem:[#allocation7 + $0x674] ss:$20 sps:$4 sm:$0xff]  }
 0x109   :  { %v4101_v1 = vld [vmem:[#allocation7 + $0x8f4] ss:$20 sps:$4 sm:$0xff]  }
 0x10a   :  { %2371 = vmatpush1.bf16.msra.mxu0 %v4012_v2  ;;  %v4096_v2 = vld [vmem:[#allocation7 + $0x670] ss:$20 sps:$4 sm:$0xff]  }
 0x10b   :  { %2412 = vmatpush1.bf16.msra.mxu1 %v4015_v3  ;;  %2372 = vmatprep.subr.bf16.mxu0 %v4020_v4  ;;  %v4099_v3 = vld [vmem:[#allocation7 + $0x8f0] ss:$20 sps:$4 sm:$0xff]  }
 0x10c   :  { %2413 = vmatprep.subr.bf16.mxu1 %v4023_v5  ;;  %v4104_v4 = vld [vmem:[#allocation7 + $0x69c] ss:$20 sps:$4 sm:$0xff]  }
 0x10d   :  { %v4107_v5 = vld [vmem:[#allocation7 + $0x91c] ss:$20 sps:$4 sm:$0xff]  }
 0x10e   :  { %2373 = vmatpush1.bf16.msra.mxu0 %v4018_v8  ;;  %v4102_v8 = vld [vmem:[#allocation7 + $0x698] ss:$20 sps:$4 sm:$0xff]  }
 0x10f   :  { %2414 = vmatpush1.bf16.msra.mxu1 %v4021_v9  ;;  %2374 = vmatprep.subr.bf16.mxu0 %v4026_v10  ;;  %v4105_v9 = vld [vmem:[#allocation7 + $0x918] ss:$20 sps:$4 sm:$0xff]  }
 0x110   :  { %2415 = vmatprep.subr.bf16.mxu1 %v4029_v11  ;;  %v4110_v10 = vld [vmem:[#allocation7 + $0x6c4] ss:$20 sps:$4 sm:$0xff]  }
 0x111   :  { %v4113_v11 = vld [vmem:[#allocation7 + $0x944] ss:$20 sps:$4 sm:$0xff]  }
 0x112   :  { %2375 = vmatpush1.bf16.msra.mxu0 %v4024_v12  ;;  %v4108_v12 = vld [vmem:[#allocation7 + $0x6c0] ss:$20 sps:$4 sm:$0xff]  }
 0x113   :  { %2416 = vmatpush1.bf16.msra.mxu1 %v4027_v13  ;;  %2376 = vmatprep.subr.bf16.mxu0 %v4032_v14  ;;  %v4111_v13 = vld [vmem:[#allocation7 + $0x940] ss:$20 sps:$4 sm:$0xff]  }
 0x114   :  { %2417 = vmatprep.subr.bf16.mxu1 %v4035_v15  ;;  %v4116_v14 = vld [vmem:[#allocation7 + $0x6ec] ss:$20 sps:$4 sm:$0xff]  }
 0x115   :  { %v4119_v15 = vld [vmem:[#allocation7 + $0x96c] ss:$20 sps:$4 sm:$0xff]  }
 0x116   :  { %2377 = vmatpush1.bf16.msra.mxu0 %v4030_v18  ;;  %v4114_v18 = vld [vmem:[#allocation7 + $0x6e8] ss:$20 sps:$4 sm:$0xff]  }
 0x117   :  { %2418 = vmatpush1.bf16.msra.mxu1 %v4033_v19  ;;  %2378 = vmatprep.subr.bf16.mxu0 %v4038_v20  ;;  %v4117_v19 = vld [vmem:[#allocation7 + $0x968] ss:$20 sps:$4 sm:$0xff]  }
 0x118   :  { %2419 = vmatprep.subr.bf16.mxu1 %v4041_v21  ;;  %v4122_v20 = vld [vmem:[#allocation7 + $0x714] ss:$20 sps:$4 sm:$0xff]  }
 0x119   :  { %v4125_v21 = vld [vmem:[#allocation7 + $0x994] ss:$20 sps:$4 sm:$0xff]  }
 0x11a   :  { %2379 = vmatpush1.bf16.msra.mxu0 %v4036_v22  ;;  %v4120_v22 = vld [vmem:[#allocation7 + $0x710] ss:$20 sps:$4 sm:$0xff]  }
 0x11b   :  { %2420 = vmatpush1.bf16.msra.mxu1 %v4039_v23  ;;  %2430 = vmatprep.subr.bf16.mxu0 %v4044_v24  ;;  %v4123_v23 = vld [vmem:[#allocation7 + $0x990] ss:$20 sps:$4 sm:$0xff]  }
 0x11c   :  { %2471 = vmatprep.subr.bf16.mxu1 %v4047_v25  ;;  %v4128_v24 = vld [vmem:[#allocation7 + $0x73c] ss:$20 sps:$4 sm:$0xff]  }
 0x11d   :  { %2381 = vmatmul.mubr.bf16.vlgmr.msra.gmra.mrb[8].mxu0 %v4490_v6  ;;  %v4131_v25 = vld [vmem:[#allocation7 + $0x9bc] ss:$20 sps:$4 sm:$0xff]  }
 0x11e   :  { %2422 = vmatmul.mubr.bf16.vlgmr.msra.gmra.mrb[8].mxu1 %v4492_v7  ;;  %2431 = vmatpush1.bf16.msra.mxu0 %v4042_v26  ;;  %v4126_v26 = vld [vmem:[#allocation7 + $0x738] ss:$20 sps:$4 sm:$0xff]  }
 0x11f   :  { %2472 = vmatpush1.bf16.msra.mxu1 %v4045_v27  ;;  %2432 = vmatprep.subr.bf16.mxu0 %v4050_v28  ;;  %v4129_v27 = vld [vmem:[#allocation7 + $0x9b8] ss:$20 sps:$4 sm:$0xff]  }
 0x120   :  { %2473 = vmatprep.subr.bf16.mxu1 %v4053_v29  ;;  %2462 = vmatprep.mubr.bf16.mxu0 %v4502_v36  ;;  %v4134_v28 = vld [vmem:[#allocation7 + $0x764] ss:$20 sps:$4 sm:$0xff]  }
 0x121   :  { %2503 = vmatprep.mubr.bf16.mxu1 %v4506_v37  ;;  %v4137_v29 = vld [vmem:[#allocation7 + $0x9e4] ss:$20 sps:$4 sm:$0xff]  }
 0x122   :  { %2433 = vmatpush1.bf16.msra.mxu0 %v4048_v30  ;;  %v4132_v30 = vld [vmem:[#allocation7 + $0x760] ss:$20 sps:$4 sm:$0xff]  }
 0x123   :  { %2474 = vmatpush1.bf16.msra.mxu1 %v4051_v31  ;;  %2434 = vmatprep.subr.bf16.mxu0 %v4056_v32  ;;  %v4135_v31 = vld [vmem:[#allocation7 + $0x9e0] ss:$20 sps:$4 sm:$0xff]   ;;  %v4138_v32 = vld [vmem:[#allocation7 + $0x150] ss:$20 sps:$4 sm:$0xff]  }
 0x124   :  { %2475 = vmatprep.subr.bf16.mxu1 %v4059_v33  ;;  %v4139_v33 = vld [vmem:[#allocation7 + $0x3d0] ss:$20 sps:$4 sm:$0xff]  }
 0x126   :  { %2435 = vmatpush1.bf16.msra.mxu0 %v4054_v34  ;;  %v4140_v34 = vld [vmem:[#allocation7 + $0x10] ss:$20 sps:$4 sm:$0xff]  }
 0x127   :  { %2476 = vmatpush1.bf16.msra.mxu1 %v4057_v35  ;;  %2436 = vmatprep.subr.bf16.mxu0 %v4062_v38  ;;  %v4141_v35 = vld [vmem:[#allocation7 + $0x290] ss:$20 sps:$4 sm:$0xff]   ;;  %v4142_v38 = vld [vmem:[#allocation7 + $0x178] ss:$20 sps:$4 sm:$0xff]  }
 0x128   :  { %2477 = vmatprep.subr.bf16.mxu1 %v4065_v39  ;;  %v4143_v39 = vld [vmem:[#allocation7 + $0x3f8] ss:$20 sps:$4 sm:$0xff]  }
 0x12a   :  { %2437 = vmatpush1.bf16.msra.mxu0 %v4060_v40  ;;  %v4144_v40 = vld [vmem:[#allocation7 + $0x38] ss:$20 sps:$4 sm:$0xff]  }
 0x12b   :  { %2478 = vmatpush1.bf16.msra.mxu1 %v4063_v41  ;;  %2438 = vmatprep.subr.bf16.mxu0 %v4068_v42  ;;  %v4145_v41 = vld [vmem:[#allocation7 + $0x2b8] ss:$20 sps:$4 sm:$0xff]   ;;  %v4146_v42 = vld [vmem:[#allocation7 + $0x1a0] ss:$20 sps:$4 sm:$0xff]  }
 0x12c   :  { %2479 = vmatprep.subr.bf16.mxu1 %v4071_v43  ;;  %v4147_v43 = vld [vmem:[#allocation7 + $0x420] ss:$20 sps:$4 sm:$0xff]  }
 0x12e   :  { %2439 = vmatpush1.bf16.msra.mxu0 %v4066_v44  ;;  %v4148_v44 = vld [vmem:[#allocation7 + $0x60] ss:$20 sps:$4 sm:$0xff]  }
 0x12f   :  { %2480 = vmatpush1.bf16.msra.mxu1 %v4069_v45  ;;  %2440 = vmatprep.subr.bf16.mxu0 %v4074_v46  ;;  %v4149_v45 = vld [vmem:[#allocation7 + $0x2e0] ss:$20 sps:$4 sm:$0xff]   ;;  %v4150_v46 = vld [vmem:[#allocation7 + $0x1c8] ss:$20 sps:$4 sm:$0xff]  }
 0x130   :  { %2481 = vmatprep.subr.bf16.mxu1 %v4077_v48  ;;  %v4151_v48 = vld [vmem:[#allocation7 + $0x448] ss:$20 sps:$4 sm:$0xff]  }
 0x132   :  { %2441 = vmatpush1.bf16.msra.mxu0 %v4072_v49  ;;  %v4152_v49 = vld [vmem:[#allocation7 + $0x88] ss:$20 sps:$4 sm:$0xff]  }
 0x133   :  { %2482 = vmatpush1.bf16.msra.mxu1 %v4075_v50  ;;  %2442 = vmatprep.subr.bf16.mxu0 %v4080_v52  ;;  %v4153_v50 = vld [vmem:[#allocation7 + $0x308] ss:$20 sps:$4 sm:$0xff]   ;;  %v4154_v52 = vld [vmem:[#allocation7 + $0x1f0] ss:$20 sps:$4 sm:$0xff]  }
 0x134   :  { %2483 = vmatprep.subr.bf16.mxu1 %v4083_v53  ;;  %v4155_v53 = vld [vmem:[#allocation7 + $0x470] ss:$20 sps:$4 sm:$0xff]  }
 0x136   :  { %2443 = vmatpush1.bf16.msra.mxu0 %v4078_v54  ;;  %v4156_v54 = vld [vmem:[#allocation7 + $0xb0] ss:$20 sps:$4 sm:$0xff]  }
 0x137   :  { %2484 = vmatpush1.bf16.msra.mxu1 %v4081_v55  ;;  %2444 = vmatprep.subr.bf16.mxu0 %v4086_v56  ;;  %v4159_v55 = vld [vmem:[#allocation7 + $0x498] ss:$20 sps:$4 sm:$0xff]  }
 0x138   :  { %2485 = vmatprep.subr.bf16.mxu1 %v4089_v57  ;;  %v4160_v56 = vld [vmem:[#allocation7 + $0xd8] ss:$20 sps:$4 sm:$0xff]  }
 0x139   :  { %v4161_v57 = vld [vmem:[#allocation7 + $0x358] ss:$20 sps:$4 sm:$0xff]  }
 0x13a   :  { %2445 = vmatpush1.bf16.msra.mxu0 %v4084_v58  ;;  %v4162_v58 = vld [vmem:[#allocation7 + $0x240] ss:$20 sps:$4 sm:$0xff]  }
 0x13b   :  { %2486 = vmatpush1.bf16.msra.mxu1 %v4087_v59  ;;  %2446 = vmatprep.subr.bf16.mxu0 %v4092_v60  ;;  %v4163_v59 = vld [vmem:[#allocation7 + $0x4c0] ss:$20 sps:$4 sm:$0xff]  }
 0x13c   :  { %2487 = vmatprep.subr.bf16.mxu1 %v4095_v61 }
 0x13e   :  { %2447 = vmatpush1.bf16.msra.mxu0 %v4090_v62 }
 0x13f   :  { %2488 = vmatpush1.bf16.msra.mxu1 %v4093_v63  ;;  %2448 = vmatprep.subr.bf16.mxu0 %v4098_v0 }
 0x140   :  { %2489 = vmatprep.subr.bf16.mxu1 %v4101_v1 }
 0x142   :  { %2449 = vmatpush1.bf16.msra.mxu0 %v4096_v2 }
 0x143   :  { %2490 = vmatpush1.bf16.msra.mxu1 %v4099_v3  ;;  %2450 = vmatprep.subr.bf16.mxu0 %v4104_v4  ;;  %v4164_v4 = vld [vmem:[#allocation7 + $0x100] ss:$20 sps:$4 sm:$0xff]  }
 0x144   :  { %2491 = vmatprep.subr.bf16.mxu1 %v4107_v5  ;;  %v4165_v5 = vld [vmem:[#allocation7 + $0x380] ss:$20 sps:$4 sm:$0xff]  }
 0x146   :  { %2451 = vmatpush1.bf16.msra.mxu0 %v4102_v8 }
 0x147   :  { %2492 = vmatpush1.bf16.msra.mxu1 %v4105_v9  ;;  %2452 = vmatprep.subr.bf16.mxu0 %v4110_v10  ;;  %v4166_v10 = vld [vmem:[#allocation7 + $0x268] ss:$20 sps:$4 sm:$0xff]  }
 0x148   :  { %2493 = vmatprep.subr.bf16.mxu1 %v4113_v11  ;;  %v4167_v11 = vld [vmem:[#allocation7 + $0x4e8] ss:$20 sps:$4 sm:$0xff]  }
 0x14a   :  { %2453 = vmatpush1.bf16.msra.mxu0 %v4108_v12  ;;  %v4168_v12 = vld [vmem:[#allocation7 + $0x128] ss:$20 sps:$4 sm:$0xff]  }
 0x14b   :  { %2494 = vmatpush1.bf16.msra.mxu1 %v4111_v13  ;;  %2454 = vmatprep.subr.bf16.mxu0 %v4116_v14  ;;  %v4169_v13 = vld [vmem:[#allocation7 + $0x3a8] ss:$20 sps:$4 sm:$0xff]   ;;  %v4170_v14 = vld [vmem:[#allocation7 + $0x650] ss:$20 sps:$4 sm:$0xff]  }
 0x14c   :  { %2495 = vmatprep.subr.bf16.mxu1 %v4119_v15  ;;  %v4171_v15 = vld [vmem:[#allocation7 + $0x8d0] ss:$20 sps:$4 sm:$0xff]  }
 0x14e   :  { %2455 = vmatpush1.bf16.msra.mxu0 %v4114_v18  ;;  %v4172_v18 = vld [vmem:[#allocation7 + $0x510] ss:$20 sps:$4 sm:$0xff]  }
 0x14f   :  { %2496 = vmatpush1.bf16.msra.mxu1 %v4117_v19  ;;  %2456 = vmatprep.subr.bf16.mxu0 %v4122_v20  ;;  %v4173_v19 = vld [vmem:[#allocation7 + $0x790] ss:$20 sps:$4 sm:$0xff]   ;;  %v4174_v20 = vld [vmem:[#allocation7 + $0x678] ss:$20 sps:$4 sm:$0xff]  }
 0x150   :  { %2497 = vmatprep.subr.bf16.mxu1 %v4125_v21  ;;  %v4175_v21 = vld [vmem:[#allocation7 + $0x8f8] ss:$20 sps:$4 sm:$0xff]  }
 0x152   :  { %2457 = vmatpush1.bf16.msra.mxu0 %v4120_v22  ;;  %v4176_v22 = vld [vmem:[#allocation7 + $0x538] ss:$20 sps:$4 sm:$0xff]  }
 0x153   :  { %2498 = vmatpush1.bf16.msra.mxu1 %v4123_v23  ;;  %2458 = vmatprep.subr.bf16.mxu0 %v4128_v24  ;;  %v4177_v23 = vld [vmem:[#allocation7 + $0x7b8] ss:$20 sps:$4 sm:$0xff]   ;;  %v4178_v24 = vld [vmem:[#allocation7 + $0x6a0] ss:$20 sps:$4 sm:$0xff]  }
 0x154   :  { %2499 = vmatprep.subr.bf16.mxu1 %v4131_v25  ;;  %v4179_v25 = vld [vmem:[#allocation7 + $0x920] ss:$20 sps:$4 sm:$0xff]  }
 0x156   :  { %2459 = vmatpush1.bf16.msra.mxu0 %v4126_v26  ;;  %v4180_v26 = vld [vmem:[#allocation7 + $0x560] ss:$20 sps:$4 sm:$0xff]  }
 0x157   :  { %2500 = vmatpush1.bf16.msra.mxu1 %v4129_v27  ;;  %2460 = vmatprep.subr.bf16.mxu0 %v4134_v28  ;;  %v4181_v27 = vld [vmem:[#allocation7 + $0x7e0] ss:$20 sps:$4 sm:$0xff]   ;;  %v4184_v28 = vld [vmem:[#allocation7 + $0x588] ss:$20 sps:$4 sm:$0xff]  }
 0x158   :  { %2501 = vmatprep.subr.bf16.mxu1 %v4137_v29  ;;  %v4185_v29 = vld [vmem:[#allocation7 + $0x808] ss:$20 sps:$4 sm:$0xff]  }
 0x15a   :  { %2461 = vmatpush1.bf16.msra.mxu0 %v4132_v30  ;;  %v4186_v30 = vld [vmem:[#allocation7 + $0x6f0] ss:$20 sps:$4 sm:$0xff]  }
 0x15b   :  { %2502 = vmatpush1.bf16.msra.mxu1 %v4135_v31  ;;  %3573 = vmatprep.subr.bf16.mxu0 %v4138_v32  ;;  %v4187_v31 = vld [vmem:[#allocation7 + $0x970] ss:$20 sps:$4 sm:$0xff]   ;;  %v4190_v32 = vld [vmem:[#allocation7 + $0x718] ss:$20 sps:$4 sm:$0xff]  }
 0x15c   :  { %3595 = vmatprep.subr.bf16.mxu1 %v4139_v33  ;;  %v4191_v33 = vld [vmem:[#allocation7 + $0x998] ss:$20 sps:$4 sm:$0xff]  }
 0x15d   :  { %2463 = vmatmul.mubr.bf16.vlgmr.msra.gmra.mrb[12].mxu0 %v4512_v16 }
 0x15e   :  { %2504 = vmatmul.mubr.bf16.vlgmr.msra.gmra.mrb[12].mxu1 %v4516_v17  ;;  %3574 = vmatpush3.bf16.msra.mxu0 %v4140_v34  ;;  %v4192_v34 = vld [vmem:[#allocation7 + $0x5d8] ss:$20 sps:$4 sm:$0xff]  }
 0x15f   :  { %3596 = vmatpush3.bf16.msra.mxu1 %v4141_v35  ;;  %3575 = vmatprep.subr.bf16.mxu0 %v4142_v38  ;;  %v4193_v35 = vld [vmem:[#allocation7 + $0x858] ss:$20 sps:$4 sm:$0xff]   ;;  %v4194_v38 = vld [vmem:[#allocation7 + $0x740] ss:$20 sps:$4 sm:$0xff]  }
 0x160   :  { %3597 = vmatprep.subr.bf16.mxu1 %v4143_v39  ;;  %2544 = vmatprep.mubr.bf16.mxu0 %v4484_v47  ;;  %v4157_v47 = vld [vmem:[#allocation7 + $0x330] ss:$20 sps:$4 sm:$0xff]   ;;  %v4195_v39 = vld [vmem:[#allocation7 + $0x9c0] ss:$20 sps:$4 sm:$0xff]  }
 0x161   :  { %2584 = vmatprep.mubr.bf16.mxu1 %v4486_v51  ;;  %v4158_v51 = vld [vmem:[#allocation7 + $0x218] ss:$20 sps:$4 sm:$0xff]  }
 0x162   :  { %3576 = vmatpush3.bf16.msra.mxu0 %v4144_v40  ;;  %v4196_v40 = vld [vmem:[#allocation7 + $0x600] ss:$20 sps:$4 sm:$0xff]  }
 0x163   :  { %3598 = vmatpush3.bf16.msra.mxu1 %v4145_v41  ;;  %3577 = vmatprep.subr.bf16.mxu0 %v4146_v42  ;;  %v4197_v41 = vld [vmem:[#allocation7 + $0x880] ss:$20 sps:$4 sm:$0xff]   ;;  %v4198_v42 = vld [vmem:[#allocation7 + $0x768] ss:$20 sps:$4 sm:$0xff]  }
 0x164   :  { %3599 = vmatprep.subr.bf16.mxu1 %v4147_v43  ;;  %v4199_v43 = vld [vmem:[#allocation7 + $0x9e8] ss:$20 sps:$4 sm:$0xff]  }
 0x166   :  { %3578 = vmatpush3.bf16.msra.mxu0 %v4148_v44  ;;  %v4200_v44 = vld [vmem:[#allocation7 + $0x628] ss:$20 sps:$4 sm:$0xff]  }
 0x167   :  { %3600 = vmatpush3.bf16.msra.mxu1 %v4149_v45  ;;  %3579 = vmatprep.subr.bf16.mxu0 %v4150_v46  ;;  %v4201_v45 = vld [vmem:[#allocation7 + $0x8a8] ss:$20 sps:$4 sm:$0xff]  }
 0x168   :  { %3601 = vmatprep.subr.bf16.mxu1 %v4151_v48  ;;  %v4202_v46 = vld [vmem:[#allocation10 + $0x40] sm:$0xff]  }
 0x169   :  { %v4218_v48 = vld [vmem:[#allocation10 + $0xc0] sm:$0xff]  }
 0x16a   :  { %3580 = vmatpush3.bf16.msra.mxu0 %v4152_v49  ;;  %v4203_v49 = vld [vmem:[#allocation10] sm:$0xff]  }
 0x16b   :  { %3602 = vmatpush3.bf16.msra.mxu1 %v4153_v50  ;;  %3581 = vmatprep.subr.bf16.mxu0 %v4154_v52  ;;  %v4219_v50 = vld [vmem:[#allocation10 + $0x80] sm:$0xff]   ;;  %v4204_v52 = vld [vmem:[#allocation10 + $0x48] sm:$0xff]  }
 0x16c   :  { %3603 = vmatprep.subr.bf16.mxu1 %v4155_v53  ;;  %v4220_v53 = vld [vmem:[#allocation10 + $0xc8] sm:$0xff]  }
 0x16e   :  { %3582 = vmatpush3.bf16.msra.mxu0 %v4156_v54  ;;  %v4205_v54 = vld [vmem:[#allocation10 + $0x8] sm:$0xff]  }
 0x16f   :  { %3604 = vmatpush3.bf16.msra.mxu1 %v4157_v47  ;;  %3583 = vmatprep.subr.bf16.mxu0 %v4158_v51  ;;  %v4221_v47 = vld [vmem:[#allocation10 + $0x88] sm:$0xff]   ;;  %v4206_v51 = vld [vmem:[#allocation10 + $0x50] sm:$0xff]  }
 0x170   :  { %3605 = vmatprep.subr.bf16.mxu1 %v4159_v55  ;;  %v2218_v60 = vpop.f32.mrb[0].mxu0  ;;  %v4222_v55 = vld [vmem:[#allocation10 + $0xd0] sm:$0xff]  }
 0x171   :  { %v2259_v61 = vpop.f32.mrb[0].mxu1  ;;  %v2220_v63 = vpop.f32.mrb[1].mxu0 }
 0x172   :  { %v4530_v62 = vadd.f32 %v2259_v61, %v2218_v60  ;;  %v2261_v0 = vpop.f32.mrb[1].mxu1  ;;  %v2222_v2 = vpop.f32.mrb[2].mxu0  ;;  %3584 = vmatpush3.bf16.msra.mxu0 %v4160_v56  ;;  %v4207_v56 = vld [vmem:[#allocation10 + $0x10] sm:$0xff]   ;;  %v2692_v60 = vlaneseq  ;;  %v4210_v61 = vld [vmem:[#allocation10 + $0x60] sm:$0xff]  }
 0x173   :  { %v4532_v1 = vadd.f32 %v2261_v0, %v2220_v63  ;;  %v2263_v3 = vpop.f32.mrb[2].mxu1  ;;  %3606 = vmatpush3.bf16.msra.mxu1 %v4161_v57  ;;  %v2223_v8 = vpop.f32.mrb[3].mxu0  ;;  %3585 = vmatprep.subr.bf16.mxu0 %v4162_v58  ;;  %v4223_v57 = vld [vmem:[#allocation10 + $0x90] sm:$0xff]   ;;  %v4208_v58 = vld [vmem:[#allocation10 + $0x58] sm:$0xff]   ;;  %v4226_v63 = vld [vmem:[#allocation10 + $0xe0] sm:$0xff]  }
 0x174   :  { %v2264_v9 = vpop.f32.mrb[3].mxu1  ;;  %3607 = vmatprep.subr.bf16.mxu1 %v4163_v59  ;;  %v4224_v59 = vld [vmem:[#allocation10 + $0xd8] sm:$0xff]   ;;  %v4540_v0 = vshrl.u32 %v2692_v60, 7  ;;  %v4211_v2 = vld [vmem:[#allocation10 + $0x20] sm:$0xff]  }
 0x175   :  { %v4227_v3 = vld [vmem:[#allocation10 + $0xa0] sm:$0xff]   ;;  %v4543_v8 = vld [vmem:[#allocation9] sm:$0x1f] }
 0x176   :  { %3586 = vmatpush3.bf16.msra.mxu0 %v4164_v4  ;;  %v4212_v4 = vld [vmem:[#allocation10 + $0x68] sm:$0xff]   ;;  %v2698_v9 = vsub.s32 1, %v4540_v0 }
 0x177   :  { %3608 = vmatpush3.bf16.msra.mxu1 %v4165_v5  ;;  %3587 = vmatprep.subr.bf16.mxu0 %v4166_v10  ;;  %v2694_v5 = vsub.s32 0, %v4540_v0  ;;  %v4213_v10 = vld [vmem:[#allocation10 + $0x28] sm:$0xff]  }
 0x178   :  { %3609 = vmatprep.subr.bf16.mxu1 %v4167_v11  ;;  %v4214_v11 = vld [vmem:[#allocation10 + $0x70] sm:$0xff]  }
 0x17a   :  { %3588 = vmatpush3.bf16.msra.mxu0 %v4168_v12  ;;  %v4228_v12 = vld [vmem:[#allocation10 + $0xe8] sm:$0xff]  }
 0x17b   :  { %3610 = vmatpush3.bf16.msra.mxu1 %v4169_v13  ;;  %3617 = vmatprep.subr.bf16.mxu0 %v4170_v14 }
 0x17c   :  { %3639 = vmatprep.subr.bf16.mxu1 %v4171_v15  ;;  %v4229_v15 = vld [vmem:[#allocation10 + $0xa8] sm:$0xff]  }
 0x17d   :  { %2545 = vmatmul.mubr.bf16.vlgmr.msra.gmra.mrb[16].mxu0 %v4490_v6  ;;  %v4182_v6 = vld [vmem:[#allocation7 + $0x6c8] ss:$20 sps:$4 sm:$0xff]  }
 0x17e   :  { %2585 = vmatmul.mubr.bf16.vlgmr.msra.gmra.mrb[16].mxu1 %v4492_v7  ;;  %3618 = vmatpush3.bf16.msra.mxu0 %v4172_v18  ;;  %v4183_v7 = vld [vmem:[#allocation7 + $0x948] ss:$20 sps:$4 sm:$0xff]  }
 0x17f   :  { %3640 = vmatpush3.bf16.msra.mxu1 %v4173_v19  ;;  %3619 = vmatprep.subr.bf16.mxu0 %v4174_v20  ;;  %v2695_v19 = vrot.slane %v4543_v8, %v2694_v5 }
 0x180   :  { %3641 = vmatprep.subr.bf16.mxu1 %v4175_v21  ;;  %2624 = vmatprep.mubr.bf16.mxu0 %v4502_v36  ;;  %v4188_v36 = vld [vmem:[#allocation7 + $0x5b0] ss:$20 sps:$4 sm:$0xff]  }
 0x181   :  { %2664 = vmatprep.mubr.bf16.mxu1 %v4506_v37  ;;  %v4189_v37 = vld [vmem:[#allocation7 + $0x830] ss:$20 sps:$4 sm:$0xff]  }
 0x182   :  { %3620 = vmatpush3.bf16.msra.mxu0 %v4176_v22 }
 0x183   :  { %3642 = vmatpush3.bf16.msra.mxu1 %v4177_v23  ;;  %3621 = vmatprep.subr.bf16.mxu0 %v4178_v24  ;;  %v2699_v23 = vrot.slane %v4543_v8, %v2698_v9 }
 0x184   :  { %3643 = vmatprep.subr.bf16.mxu1 %v4179_v25 }
 0x186   :  { %3622 = vmatpush3.bf16.msra.mxu0 %v4180_v26  ;;  %v4215_v26 = vld [vmem:[#allocation10 + $0x30] sm:$0xff]  }
 0x187   :  { %3644 = vmatpush3.bf16.msra.mxu1 %v4181_v27  ;;  %3623 = vmatprep.subr.bf16.mxu0 %v4182_v6 }
 0x188   :  { %3645 = vmatprep.subr.bf16.mxu1 %v4183_v7 }
 0x18a   :  { %3624 = vmatpush3.bf16.msra.mxu0 %v4184_v28  ;;  %v4216_v28 = vld [vmem:[#allocation10 + $0x78] sm:$0xff]  }
 0x18b   :  { %3646 = vmatpush3.bf16.msra.mxu1 %v4185_v29  ;;  %3625 = vmatprep.subr.bf16.mxu0 %v4186_v30  ;;  %v4231_v30 = vld [vmem:[#allocation10 + $0xb0] sm:$0xff]  }
 0x18c   :  { %3647 = vmatprep.subr.bf16.mxu1 %v4187_v31 }
 0x18e   :  { %3626 = vmatpush3.bf16.msra.mxu0 %v4188_v36 }
 0x18f   :  { %3648 = vmatpush3.bf16.msra.mxu1 %v4189_v37  ;;  %3627 = vmatprep.subr.bf16.mxu0 %v4190_v32  ;;  %v4232_v32 = vld [vmem:[#allocation10 + $0xf8] sm:$0xff]  }
 0x190   :  { %3649 = vmatprep.subr.bf16.mxu1 %v4191_v33 }
 0x192   :  { %3628 = vmatpush3.bf16.msra.mxu0 %v4192_v34  ;;  %v4233_v34 = vld [vmem:[#allocation10 + $0xb8] sm:$0xff]  }
 0x193   :  { %3650 = vmatpush3.bf16.msra.mxu1 %v4193_v35  ;;  %3629 = vmatprep.subr.bf16.mxu0 %v4194_v38 }
 0x194   :  { %3651 = vmatprep.subr.bf16.mxu1 %v4195_v39  ;;  %v4234_v39 = vld [vmem:[#allocation10 + $0x100] sm:$0xff]  }
 0x196   :  { %3630 = vmatpush3.bf16.msra.mxu0 %v4196_v40  ;;  %v4391_v40 = vmov 0.0  }
 0x197   :  { %3652 = vmatpush3.bf16.msra.mxu1 %v4197_v41  ;;  %3631 = vmatprep.subr.bf16.mxu0 %v4198_v42  ;;  %v4235_v41 = vld [vmem:[#allocation10 + $0x108] sm:$0xff]   ;;  %v4236_v42 = vld [vmem:[#allocation10 + $0x110] sm:$0xff]  }
 0x198   :  { %3653 = vmatprep.subr.bf16.mxu1 %v4199_v43  ;;  %v4237_v43 = vld [vmem:[#allocation10 + $0x118] sm:$0xff]  }
 0x19a   :  { %3632 = vmatpush3.bf16.msra.mxu0 %v4200_v44  ;;  %v4238_v44 = vld [vmem:[#allocation10 + $0x120] sm:$0xff]  }
 0x19b   :  { %3654 = vmatpush3.bf16.msra.mxu1 %v4201_v45  ;;  %3661 = vmatprep.subr.bf16.mxu0 %v4202_v46 }
 0x19c   :  { %3683 = vmatprep.subr.bf16.mxu1 %v4218_v48 }
 0x19d   :  { %2625 = vmatmul.mubr.bf16.vlgmr.msra.gmra.mrb[20].mxu0 %v4512_v16  ;;  %v4209_v16 = vld [vmem:[#allocation10 + $0x18] sm:$0xff]  }
 0x19e   :  { %2665 = vmatmul.mubr.bf16.vlgmr.msra.gmra.mrb[20].mxu1 %v4516_v17  ;;  %3662 = vmatpush3.bf16.msra.mxu0 %v4203_v49  ;;  %v4225_v17 = vld [vmem:[#allocation10 + $0x98] sm:$0xff]  }
 0x19f   :  { %3684 = vmatpush3.bf16.msra.mxu1 %v4219_v50  ;;  %3663 = vmatprep.subr.bf16.mxu0 %v4204_v52  ;;  %v4239_v52 = vld [vmem:[#allocation10 + $0x128] sm:$0xff]  }
 0x1a0   :  { %3685 = vmatprep.subr.bf16.mxu1 %v4220_v53 }
 0x1a2   :  { %3664 = vmatpush3.bf16.msra.mxu0 %v4205_v54 }
 0x1a3   :  { %3686 = vmatpush3.bf16.msra.mxu1 %v4221_v47  ;;  %3665 = vmatprep.subr.bf16.mxu0 %v4206_v51 }
 0x1a4   :  { %3687 = vmatprep.subr.bf16.mxu1 %v4222_v55 }
 0x1a6   :  { %3666 = vmatpush3.bf16.msra.mxu0 %v4207_v56  ;;  %v4240_v56 = vld [vmem:[#allocation10 + $0x130] sm:$0xff]  }
 0x1a7   :  { %3688 = vmatpush3.bf16.msra.mxu1 %v4223_v57  ;;  %3667 = vmatprep.subr.bf16.mxu0 %v4208_v58  ;;  %v4241_v57 = vld [vmem:[#allocation10 + $0x138] sm:$0xff]   ;;  %v2702_v58 = vsub.s32 2, %v4540_v0 }
 0x1a8   :  { %3689 = vmatprep.subr.bf16.mxu1 %v4224_v59  ;;  %v2706_v59 = vsub.s32 3, %v4540_v0 }
 0x1aa   :  { %3668 = vmatpush3.bf16.msra.mxu0 %v4209_v16 }
 0x1ab   :  { %3690 = vmatpush3.bf16.msra.mxu1 %v4225_v17  ;;  %3669 = vmatprep.subr.bf16.mxu0 %v4210_v61  ;;  %v2703_v61 = vrot.slane %v4543_v8, %v2702_v58 }
 0x1ac   :  { %3691 = vmatprep.subr.bf16.mxu1 %v4226_v63 }
 0x1ae   :  { %3670 = vmatpush3.bf16.msra.mxu0 %v4211_v2 }
 0x1af   :  { %3692 = vmatpush3.bf16.msra.mxu1 %v4227_v3  ;;  %3671 = vmatprep.subr.bf16.mxu0 %v4212_v4  ;;  %v2707_v4 = vrot.slane %v4543_v8, %v2706_v59 }
 0x1b0   :  { %v2300_v13 = vpop.f32.mrb[4].mxu0  ;;  %3693 = vmatprep.subr.bf16.mxu1 %v4228_v12 }
 0x1b1   :  { %v2341_v14 = vpop.f32.mrb[4].mxu1  ;;  %v2301_v18 = vadd.f32 %v2300_v13, %v4530_v62  ;;  %v2302_v20 = vpop.f32.mrb[5].mxu0  ;;  %v4230_v62 = vld [vmem:[#allocation10 + $0xf0] sm:$0xff]  }
 0x1b2   :  { %v2343_v21 = vpop.f32.mrb[5].mxu1  ;;  %v2303_v22 = vadd.f32 %v2302_v20, %v4532_v1  ;;  %v2304_v24 = vpop.f32.mrb[6].mxu0  ;;  %3672 = vmatpush3.bf16.msra.mxu0 %v4213_v10  ;;  %v4217_v1 = vld [vmem:[#allocation10 + $0x38] sm:$0xff]  }
 0x1b3   :  { %v2345_v25 = vpop.f32.mrb[6].mxu1  ;;  %3694 = vmatpush3.bf16.msra.mxu1 %v4229_v15  ;;  %v2342_v27 = vadd.f32 %v2341_v14, %v2301_v18  ;;  %v2305_v6 = vpop.f32.mrb[7].mxu0  ;;  %3673 = vmatprep.subr.bf16.mxu0 %v4214_v11 }
 0x1b4   :  { %v2346_v7 = vpop.f32.mrb[7].mxu1  ;;  %v2344_v29 = vadd.f32 %v2343_v21, %v2303_v22  ;;  %3695 = vmatprep.subr.bf16.mxu1 %v4230_v62 }
 0x1b5   :  { %v2717_v31 = vadd.f32 %v2695_v19, %v2342_v27 }
 0x1b6   :  { %v2718_v36 = vadd.f32 %v2699_v23, %v2344_v29  ;;  %3674 = vmatpush3.bf16.msra.mxu0 %v4215_v26 }
 0x1b7   :  { %3696 = vmatpush3.bf16.msra.mxu1 %v4231_v30  ;;  %v2722_v37 = vmax.f32 %v2717_v31, 0.0  ;;  %3675 = vmatprep.subr.bf16.mxu0 %v4216_v28 }
 0x1b8   :  { %v2723_v33 = vmax.f32 %v2718_v36, 0.0  ;;  %3697 = vmatprep.subr.bf16.mxu1 %v4232_v32  ;;  %v2710_v36 = vsub.s32 4, %v4540_v0 }
 0x1b9   :  { %v2727_v38 = vpack.c.bf16 %v2722_v37, %v2722_v37 }
 0x1ba   :  { %v2728_v35 = vpack.c.bf16 %v2723_v33, %v2723_v33  ;;  %3676 = vmatpush3.bf16.msra.mxu0 %v4217_v1 }
 0x1bb   :  { %3698 = vmatpush3.bf16.msra.mxu1 %v4233_v34  ;;  %3714 = vmatprep.subr.bf16.mxu0 %v4391_v40 }
 0x1bc   :  { %3085 = vmatprep.mubr.bf16.mxu0 %v2728_v35 }
 0x1bd   :  { %3086 = vmatmul.mubr.bf16.vlgmr.msra.gmra.mrb[24].mxu0 %v2727_v38 }
 0x1be   :  { %3715 = vmatpush3.bf16.msra.mxu0 %v4234_v39  ;;  %3730 = vmatprep.mubr.msk.bf16.mxu0 %vm4392_vm0, %v4391_v40 }
 0x1bf   :  { %3716 = vmatprep.subr.bf16.mxu0 %v4391_v40 }
 0x1c2   :  { %3717 = vmatpush3.bf16.msra.mxu0 %v4235_v41  ;;  %v2711_v41 = vrot.slane %v4543_v8, %v2710_v36 }
 0x1c3   :  { %3718 = vmatprep.subr.bf16.mxu0 %v4391_v40 }
 0x1c6   :  { %3719 = vmatpush3.bf16.msra.mxu0 %v4236_v42 }
 0x1c7   :  { %3720 = vmatprep.subr.bf16.mxu0 %v4391_v40 }
 0x1ca   :  { %3721 = vmatpush3.bf16.msra.mxu0 %v4237_v43 }
 0x1cb   :  { %3722 = vmatprep.subr.bf16.mxu0 %v4391_v40 }
 0x1ce   :  { %3723 = vmatpush3.bf16.msra.mxu0 %v4238_v44 }
 0x1cf   :  { %3724 = vmatprep.subr.bf16.mxu0 %v4391_v40 }
 0x1d2   :  { %3725 = vmatpush3.bf16.msra.mxu0 %v4239_v52 }
 0x1d3   :  { %3726 = vmatprep.subr.bf16.mxu0 %v4391_v40 }
 0x1d6   :  { %3727 = vmatpush3.bf16.msra.mxu0 %v4240_v56 }
 0x1d7   :  { %3728 = vmatprep.subr.bf16.mxu0 %v4391_v40 }
 0x1da   :  { %3729 = vmatpush3.bf16.msra.mxu0 %v4241_v57  ;;  %v3572_v57 = vld [vmem:[#allocation12] ss:$0 sm:$0xff] }
 0x1f0   :  { %v2382_v45 = vpop.f32.mrb[8].mxu0 }
 0x1f1   :  { %v2423_v46 = vpop.f32.mrb[8].mxu1  ;;  %v2384_v49 = vpop.f32.mrb[9].mxu0 }
 0x1f2   :  { %v2424_v48 = vadd.f32 %v2423_v46, %v2382_v45  ;;  %v2425_v50 = vpop.f32.mrb[9].mxu1  ;;  %v2386_v54 = vpop.f32.mrb[10].mxu0 }
 0x1f3   :  { %v2426_v53 = vadd.f32 %v2425_v50, %v2384_v49  ;;  %v2427_v47 = vpop.f32.mrb[10].mxu1  ;;  %v2387_v51 = vpop.f32.mrb[11].mxu0 }
 0x1f4   :  { %v2428_v55 = vpop.f32.mrb[11].mxu1 }
 0x230   :  { %v2464_v60 = vpop.f32.mrb[12].mxu0 }
 0x231   :  { %v2505_v16 = vpop.f32.mrb[12].mxu1  ;;  %v2465_v17 = vadd.f32 %v2464_v60, %v2424_v48  ;;  %v2466_v63 = vpop.f32.mrb[13].mxu0 }
 0x232   :  { %v2507_v2 = vpop.f32.mrb[13].mxu1  ;;  %v2467_v3 = vadd.f32 %v2466_v63, %v2426_v53  ;;  %v2468_v5 = vpop.f32.mrb[14].mxu0 }
 0x233   :  { %v2509_v9 = vpop.f32.mrb[14].mxu1  ;;  %v2506_v10 = vadd.f32 %v2505_v16, %v2465_v17  ;;  %v2469_v11 = vpop.f32.mrb[15].mxu0 }
 0x234   :  { %v2510_v12 = vpop.f32.mrb[15].mxu1  ;;  %v2508_v13 = vadd.f32 %v2507_v2, %v2467_v3 }
 0x235   :  { %v2719_v14 = vadd.f32 %v2703_v61, %v2506_v10 }
 0x236   :  { %v2720_v15 = vadd.f32 %v2707_v4, %v2508_v13 }
 0x237   :  { %v2724_v18 = vmax.f32 %v2719_v14, 0.0 }
 0x238   :  { %v2725_v19 = vmax.f32 %v2720_v15, 0.0 }
 0x239   :  { %v2729_v21 = vpack.c.bf16 %v2724_v18, %v2724_v18 }
 0x23a   :  { %v2730_v20 = vpack.c.bf16 %v2725_v19, %v2725_v19 }
 0x23c   :  { %3125 = vmatprep.mubr.bf16.mxu1 %v2730_v20 }
 0x23d   :  { %3126 = vmatmul.mubr.bf16.vlgmr.msra.gmra.mrb[24].mxu1 %v2729_v21 }
 0x250   :  { %v3589_v22 = vpop.f32.mrb[16].mxu0 }
 0x251   :  { %v3611_v23 = vpop.f32.mrb[16].mxu1  ;;  %v3590_v24 = vpop.f32.mrb[17].mxu0 }
 0x252   :  { %v3612_v25 = vpop.f32.mrb[17].mxu1  ;;  %v3591_v26 = vadd.f32 %v3590_v24, %v3589_v22  ;;  %v3592_v6 = vpop.f32.mrb[18].mxu0 }
 0x253   :  { %v3613_v27 = vadd.f32 %v3612_v25, %v3611_v23  ;;  %v3614_v7 = vpop.f32.mrb[18].mxu1  ;;  %v3593_v28 = vpop.f32.mrb[19].mxu0 }
 0x254   :  { %v3615_v62 = vpop.f32.mrb[19].mxu1 }
 0x255   :  { %v2587_v29 = vadd.f32 %v3613_v27, %v3591_v26 }
 0x270   :  { %v3633_v30 = vpop.f32.mrb[20].mxu0 }
 0x271   :  { %v3655_v31 = vpop.f32.mrb[20].mxu1  ;;  %v3634_v1 = vpop.f32.mrb[21].mxu0 }
 0x272   :  { %v3656_v37 = vpop.f32.mrb[21].mxu1  ;;  %v3635_v32 = vadd.f32 %v3634_v1, %v3633_v30  ;;  %v3636_v34 = vpop.f32.mrb[22].mxu0 }
 0x273   :  { %v3657_v33 = vadd.f32 %v3656_v37, %v3655_v31  ;;  %v3658_v35 = vpop.f32.mrb[22].mxu1  ;;  %v3637_v38 = vpop.f32.mrb[23].mxu0 }
 0x274   :  { %v3659_v39 = vpop.f32.mrb[23].mxu1  ;;  %v2627_v40 = vadd.f32 %v3635_v32, %v2587_v29 }
 0x276   :  { %v2667_v42 = vadd.f32 %v3657_v33, %v2627_v40 }
 0x278   :  { %v2721_v43 = vadd.f32 %v2711_v41, %v2667_v42 }
 0x27a   :  { %v2726_v44 = vmax.f32 %v2721_v43, 0.0 }
 0x27c   :  { %v2731_v45 = vpack.c.bf16 %v2726_v44, %v2726_v44 }
 0x27e   :  { %3731 = vmatmul.mubr.bf16.vlgmr.msra.gmra.mrb[28].mxu0 %v2731_v45 }
 0x290   :  { %v3677_v46 = vpop.f32.mrb[24].mxu0 }
 0x291   :  { %v3678_v48 = vpop.f32.mrb[25].mxu0 }
 0x292   :  { %v3679_v49 = vadd.f32 %v3678_v48, %v3677_v46  ;;  %v3680_v0 = vpop.f32.mrb[26].mxu0 }
 0x293   :  { %v3681_v50 = vpop.f32.mrb[27].mxu0 }
 0x310   :  { %v3699_v52 = vpop.f32.mrb[24].mxu1 }
 0x311   :  { %v3700_v53 = vpop.f32.mrb[25].mxu1 }
 0x312   :  { %v3701_v54 = vadd.f32 %v3700_v53, %v3699_v52  ;;  %v3702_v47 = vpop.f32.mrb[26].mxu1 }
 0x313   :  { %v3703_v51 = vpop.f32.mrb[27].mxu1 }
 0x314   :  { %v3128_v55 = vadd.f32 %v3701_v54, %v3679_v49 }
 0x351   :  { %v3167_v56 = vpop.f32.mrb[28].mxu0 }
 0x352   :  { %v3168_v8 = vadd.f32 %v3167_v56, %v3128_v55  ;;  %v3732_v58 = vpop.f32.mrb[29].mxu0 }
 0x353   :  { %v3170_v59 = vpop.f32.mrb[30].mxu0 }
 0x354   :  { %v3185_v60 = vadd.f32 %v3572_v57, %v3168_v8  ;;  %v3733_v16 = vpop.f32.mrb[31].mxu0 }
 0x356   :  { %3186 = vst [vmem:[#allocation13] sm:$0xff] %v3185_v60 }
 0x357   :  { %4363 = shalt.err (!%p4360_p2)
}
 0x358   :  { %s4364_s7 = scalar_lea.hbm %s4573_s5, 128 }
 0x359   :  { %p4365_p3 = scmp.ne.s32.totalorder %s4573_s5, %s4364_s7  ;;  %p4368_p4 = scmp.lt.u32.totalorder %s4364_s7, %s4573_s5 }
 0x35b   :  { %p4370_p5 = pnand %p4368_p4, %p4365_p3 }
 0x35d   :  { %4373 = shalt.err (!%p4370_p5)
}
 0x35e   :  { %3196 = dma.vmem_to_hbm [thread:$0]  %s3194_s29, 128, %s4573_s5, [#allocation6]  }
 0x35f   :  { %4380 = dma.done.wait [#allocation6], 128  }
 0x360   :  { %4381 = vsyncadd [#allocation6], 4294967168 }
 0x361   :  { %3200 = vsyncpa [#allocation5], 1 }
 0x362   :  { %3201 = vsyncpa [#allocation8], 1 }
 0x363   :  { %3202 = vsyncpa [#allocation11], 1 }
 0x364   :  { %3203 = vsyncpa [#allocation6], 1 }

</bundles_post_ra>
